<compile_context>
chip_gen: v6e
topology: v6e:2x2x1
jax: 0.10.0
libtpu: 0.0.40
codegen_flags: <defaults>
</compile_context>

<pallas_src>
import functools
import math

import jax
import jax.numpy as jnp
from jax import lax
from jax.experimental import pallas as pl
from jax.experimental.pallas import tpu as pltpu

_LANE = 128
_SUBLANE = 8


def _round_up(n, m):
    return ((n + m - 1) // m) * m


def _device_kind():
    try:
        return jax.devices()[0].device_kind.lower()
    except Exception:
        return ""


def _default_exp_dtype():
    # v5-family EUP has no bf16 path -> keep exp in f32 there; v6e/v7x get
    # ~2x exp throughput from bf16 (the N^2 softmax exp is the EUP hot spot).
    return jnp.float32 if "v5" in _device_kind() else jnp.bfloat16


def _default_vmem_limit_bytes():
    # Generation-aware scoped-VMEM limit (leave ~1/8 of physical as headroom).
    try:
        cap = getattr(pltpu.get_tpu_info(), "vmem_capacity_bytes", None)
        if cap:
            return int(min((int(cap) * 7) // 8, 112 * 1024 * 1024))
    except Exception:
        pass
    kind = _device_kind()
    return 56 * 1024 * 1024 if "v7" in kind else 96 * 1024 * 1024


# ----------------------------------------------------------------------------
# Fused HCLLayer kernel
# ----------------------------------------------------------------------------
def _hcl_layer_kernel(*refs, f_real, d_v_real, hidden_real,
                      dkp, dvp, fp, hp,
                      mm_dtype, exp_dtype, has_attn_bias, return_attn):
    i = 0
    a_ref = refs[i]; i += 1          # (N, N)   mm_dtype (pre-cast in wrapper)
    x_ref = refs[i]; i += 1          # (N, fp)  f32, zero-padded features
    wqkv_ref = refs[i]; i += 1       # (fp, 2*dkp+dvp) mm_dtype
    wo_ref = refs[i]; i += 1         # (dvp, fp) mm_dtype
    w1_ref = refs[i]; i += 1         # (fp, hp)  mm_dtype
    w2_ref = refs[i]; i += 1         # (hp, fp)  mm_dtype
    bias_ref = refs[i]; i += 1       # (8, C)    f32 packed small vectors
    ab_ref = None
    if has_attn_bias:
        ab_ref = refs[i]; i += 1     # (N, N) f32 additive attention bias
    out_ref = refs[i]; i += 1        # (N, fp) f32
    attn_ref = refs[i] if return_attn else None

    a = a_ref[...]                   # already mm_dtype: no per-matmul cast
    x = x_ref[...]
    bias = bias_ref[...]

    def mm(lhs, rhs):
        return jnp.dot(lhs.astype(mm_dtype), rhs.astype(mm_dtype),
                       preferred_element_type=jnp.float32)

    def gconv(h, w_ref, b, in_real, out_real):
        # Contract the smaller real feature dim against A (DGL-style choice).
        w = w_ref[...]
        if out_real < in_real:
            return mm(a, mm(h, w)) + b       # A @ (H W)
        return mm(mm(a, h), w) + b           # (A H) @ W

    # ---- self-attention: shared A@X + fused Q/K/V projection ---------------
    ax = mm(a, x)                            # (N, fp)   A_hat @ X, computed once
    qkv = mm(ax, wqkv_ref[...])              # (N, 2*dkp + dvp)
    # 1/sqrt(d_k) is pre-folded into Wq / bq by the wrapper.
    q = qkv[:, 0:dkp] + bias[0:1, 0:dkp]
    k = qkv[:, dkp:2 * dkp] + bias[1:2, 0:dkp]
    v = qkv[:, 2 * dkp:2 * dkp + dvp] + bias[2:3, 0:dvp]

    # scores via dot_general over the last dims (no explicit K transpose).
    scores = lax.dot_general(q.astype(mm_dtype), k.astype(mm_dtype),
                             (((1,), (1,)), ((), ())),
                             preferred_element_type=jnp.float32)     # (N, N)
    if has_attn_bias:
        scores = scores + ab_ref[...]

    m = jnp.max(scores, axis=-1, keepdims=True)
    z = scores - m
    if exp_dtype != jnp.float32:
        z = z.astype(exp_dtype)
    e = jnp.exp(z)                                            # EUP slot
    s = jnp.sum(e, axis=-1, keepdims=True, dtype=jnp.float32)
    inv_s = pl.reciprocal(s, approx=True)

    ctx = mm(e, v) * inv_s                    # normalize AFTER the PV matmul
    if return_attn:
        attn_ref[...] = (e.astype(jnp.float32) * inv_s).astype(attn_ref.dtype)

    attn_out = gconv(ctx, wo_ref, bias[3:4, 0:fp], d_v_real, f_real)  # (N, fp)

    # ---- shared LayerNorm over the real feature width -----------------------
    gamma = bias[6:7, 0:fp]
    beta = bias[7:8, 0:fp]
    inv_f = 1.0 / float(f_real)
    if fp != f_real:
        feat_mask = lax.broadcasted_iota(jnp.int32, (1, fp), 1) < f_real
    else:
        feat_mask = None

    def layernorm(h):
        # Pad columns of h are exactly zero, so the mean over the padded width
        # divided by the real count is exact; the centered tensor is masked so
        # the (cancellation-free) two-pass variance never sees the pads, and
        # gamma/beta are zero in the pad region so pads stay exactly 0.
        mu = jnp.sum(h, axis=-1, keepdims=True) * inv_f
        c = h - mu
        if feat_mask is not None:
            c = jnp.where(feat_mask, c, 0.0)
        var = jnp.sum(c * c, axis=-1, keepdims=True) * inv_f
        return c * lax.rsqrt(var + 1e-5) * gamma + beta

    # Matches the PyTorch module: ln(attn_out) + inputs feeds the feedforward,
    # and the layer output is ln(feedforward) with no extra residual.
    h = layernorm(attn_out) + x
    hid = jnp.maximum(
        gconv(h, w1_ref, bias[4:5, 0:hp], f_real, hidden_real), 0.0)
    ff = gconv(hid, w2_ref, bias[5:6, 0:fp], hidden_real, f_real)
    out_ref[...] = layernorm(ff).astype(out_ref.dtype)


def pack_hcl_layer_params(p, mm_dtype=jnp.bfloat16):
    """Pad/pack one HCLLayer's params (hoistable out of the per-call path)."""
    f32 = jnp.float32
    F, d_k = p["wq"].shape
    d_v = p["wv"].shape[1]
    hidden = p["w1"].shape[1]

    fp = _round_up(F, _LANE)
    dkp = _round_up(d_k, _LANE)
    dvp = _round_up(d_v, _LANE)
    hp = _round_up(hidden, _LANE)
    c = max(fp, dkp, dvp, hp)
    inv_sqrt_dk = 1.0 / math.sqrt(float(d_k))

    wqkv = jnp.zeros((fp, 2 * dkp + dvp), f32)
    wqkv = wqkv.at[:F, 0:d_k].set(p["wq"].astype(f32) * inv_sqrt_dk)
    wqkv = wqkv.at[:F, dkp:dkp + d_k].set(p["wk"].astype(f32))
    wqkv = wqkv.at[:F, 2 * dkp:2 * dkp + d_v].set(p["wv"].astype(f32))

    wo = jnp.zeros((dvp, fp), f32).at[:d_v, :F].set(p["wo"].astype(f32))
    w1 = jnp.zeros((fp, hp), f32).at[:F, :hidden].set(p["w1"].astype(f32))
    w2 = jnp.zeros((hp, fp), f32).at[:hidden, :F].set(p["w2"].astype(f32))

    bias = jnp.zeros((8, c), f32)
    bias = bias.at[0, :d_k].set(p["bq"].reshape(-1).astype(f32) * inv_sqrt_dk)
    bias = bias.at[1, :d_k].set(p["bk"].reshape(-1).astype(f32))
    bias = bias.at[2, :d_v].set(p["bv"].reshape(-1).astype(f32))
    bias = bias.at[3, :F].set(p["bo"].reshape(-1).astype(f32))
    bias = bias.at[4, :hidden].set(p["b1"].reshape(-1).astype(f32))
    bias = bias.at[5, :F].set(p["b2"].reshape(-1).astype(f32))
    bias = bias.at[6, :F].set(p["ln_gamma"].reshape(-1).astype(f32))
    bias = bias.at[7, :F].set(p["ln_beta"].reshape(-1).astype(f32))

    return dict(
        wqkv=wqkv.astype(mm_dtype), wo=wo.astype(mm_dtype),
        w1=w1.astype(mm_dtype), w2=w2.astype(mm_dtype), bias=bias,
        dims=dict(F=F, d_k=d_k, d_v=d_v, hidden=hidden,
                  fp=fp, dkp=dkp, dvp=dvp, hp=hp),
        mm_dtype=mm_dtype)


def hcl_layer_packed(a_mm, x_p, packed, attn_bias=None, *,
                     return_attn=True, exp_dtype=None, vmem_limit_bytes=None):
    """One fused HCLLayer.  a_mm: (N,N) in the matmul dtype; x_p: (N,fp) f32."""
    N = x_p.shape[0]
    assert N % _SUBLANE == 0, "N must be a multiple of 8"
    # TODO(synk): support N % 8 != 0 by padding nodes and masking padded key
    #             columns with -inf before the softmax.
    d = packed["dims"]
    fp = d["fp"]
    if exp_dtype is None:
        exp_dtype = _default_exp_dtype()
    if vmem_limit_bytes is None:
        vmem_limit_bytes = _default_vmem_limit_bytes()

    kernel = functools.partial(
        _hcl_layer_kernel,
        f_real=d["F"], d_v_real=d["d_v"], hidden_real=d["hidden"],
        dkp=d["dkp"], dvp=d["dvp"], fp=fp, hp=d["hp"],
        mm_dtype=packed["mm_dtype"], exp_dtype=exp_dtype,
        has_attn_bias=attn_bias is not None, return_attn=return_attn)

    args = [a_mm, x_p, packed["wqkv"], packed["wo"], packed["w1"],
            packed["w2"], packed["bias"]]
    if attn_bias is not None:
        args.append(attn_bias.astype(jnp.float32))

    vmem = pl.BlockSpec(memory_space=pltpu.MemorySpace.VMEM)
    out_shapes = [jax.ShapeDtypeStruct((N, fp), jnp.float32)]
    if return_attn:
        out_shapes.append(jax.ShapeDtypeStruct((N, N), jnp.float32))

    res = pl.pallas_call(
        kernel,
        out_shape=tuple(out_shapes),
        in_specs=[vmem] * len(args),
        out_specs=tuple([vmem] * len(out_shapes)),
        compiler_params=pltpu.CompilerParams(vmem_limit_bytes=vmem_limit_bytes),
    )(*args)
    if return_attn:
        return res[0], res[1]
    return res[0], None


# ----------------------------------------------------------------------------
# Fused classifier head: fe = relu(x @ W1 + b1); out = fe @ W2 + b2
# ----------------------------------------------------------------------------
def _classifier_kernel(x_ref, w1_ref, w2_ref, bias_ref, fe_ref, out_ref, *,
                       mm_dtype, hp, ncp):
    b = bias_ref[...]

    def mm(lhs, rhs):
        return jnp.dot(lhs.astype(mm_dtype), rhs.astype(mm_dtype),
                       preferred_element_type=jnp.float32)

    fe = jnp.maximum(mm(x_ref[...], w1_ref[...]) + b[0:1, 0:hp], 0.0)
    fe_ref[...] = fe.astype(fe_ref.dtype)
    out_ref[...] = (mm(fe, w2_ref[...]) + b[1:2, 0:ncp]).astype(out_ref.dtype)


def hcl_classifier(x_p, params, *, F, matmul_dtype=jnp.bfloat16,
                   vmem_limit_bytes=None):
    f32 = jnp.float32
    N, fp = x_p.shape
    w1, b1 = params["cla1"]               # (F, 128), (1, 128)
    w2, b2 = params["cla2"]               # (128, num_class), (1, num_class)
    hid = w1.shape[1]
    num_class = w2.shape[1]
    hp = _round_up(hid, _LANE)
    ncp = _round_up(num_class, _LANE)
    c = max(hp, ncp)

    w1p = jnp.zeros((fp, hp), f32).at[:F, :hid].set(w1.astype(f32))
    w2p = jnp.zeros((hp, ncp), f32).at[:hid, :num_class].set(w2.astype(f32))
    bias = jnp.zeros((2, c), f32)
    bias = bias.at[0, :hid].set(b1.reshape(-1).astype(f32))
    bias = bias.at[1, :num_class].set(b2.reshape(-1).astype(f32))

    if vmem_limit_bytes is None:
        vmem_limit_bytes = _default_vmem_limit_bytes()

    kernel = functools.partial(_classifier_kernel, mm_dtype=matmul_dtype,
                               hp=hp, ncp=ncp)
    vmem = pl.BlockSpec(memory_space=pltpu.MemorySpace.VMEM)
    fe_p, out_p = pl.pallas_call(
        kernel,
        out_shape=(jax.ShapeDtypeStruct((N, hp), f32),
                   jax.ShapeDtypeStruct((N, ncp), f32)),
        in_specs=[vmem] * 4,
        out_specs=(vmem, vmem),
        compiler_params=pltpu.CompilerParams(vmem_limit_bytes=vmem_limit_bytes),
    )(x_p, w1p.astype(matmul_dtype), w2p.astype(matmul_dtype), bias)
    return out_p[:, :num_class], fe_p[:, :hid]


# ----------------------------------------------------------------------------
# Full HCL forward
# ----------------------------------------------------------------------------
def hcl_forward(a_hat, node_emb, path_emb, path_node_dict, params, *,
                n_path_node, matmul_dtype=jnp.bfloat16, exp_dtype=None,
                vmem_limit_bytes=None):
    """HCL.forward: path injection -> n_layers HCLLayer (attention of layer i
    is the additive score bias of layer i+1) -> classifier.  Returns (out, fe).
    Dropout layers are identity (inference)."""
    f32 = jnp.float32
    N, F = node_emb.shape

    # -- path-node embedding injection (dict/python-driven) -------------------
    # TODO(synk): the dict-driven per-node scatter has no clean Pallas
    #             equivalent; done with plain jnp indexed adds here.
    node_emb = node_emb.astype(f32)
    for path_idx in path_node_dict:
        cnt = 0
        for node in path_node_dict[path_idx]:
            if cnt < n_path_node:
                w, b = params["path"][cnt]
                upd = path_emb[path_idx].astype(f32) @ w.astype(f32) \
                    + b.reshape(-1).astype(f32)
                node_emb = node_emb.at[node].add(upd)
                cnt += 1

    # -- cast A_hat + pack all layer weights ONCE ------------------------------
    a_mm = a_hat.astype(matmul_dtype)
    packed_layers = [pack_hcl_layer_params(lp, matmul_dtype)
                     for lp in params["layers"]]
    fp = packed_layers[0]["dims"]["fp"]
    x_p = jnp.zeros((N, fp), f32).at[:, :F].set(node_emb)   # lane-dense once

    attn = None
    n_layers = len(packed_layers)
    for li, packed in enumerate(packed_layers):
        last = li == n_layers - 1
        x_p, attn = hcl_layer_packed(
            a_mm, x_p, packed, attn_bias=attn,
            return_attn=not last,            # last layer's attn is unused
            exp_dtype=exp_dtype, vmem_limit_bytes=vmem_limit_bytes)

    out, fe = hcl_classifier(x_p, params, F=F, matmul_dtype=matmul_dtype,
                             vmem_limit_bytes=vmem_limit_bytes)
    return out, fe


# ----------------------------------------------------------------------------
# Pure-JAX reference (mirrors the PyTorch module exactly)
# ----------------------------------------------------------------------------
def hcl_forward_ref(a, node_emb, path_emb, path_node_dict, params, *,
                    n_path_node):
    node_emb = node_emb.astype(jnp.float32)
    for path_idx in path_node_dict:
        cnt = 0
        for node in path_node_dict[path_idx]:
            if cnt < n_path_node:
                w, b = params["path"][cnt]
                node_emb = node_emb.at[node].add(
                    path_emb[path_idx] @ w + b.reshape(-1))
                cnt += 1

    def gconv(h, w, b):
        return a @ (h @ w) + b

    x = node_emb
    attn_bias = None
    for p in params["layers"]:
        q = gconv(x, p["wq"], p["bq"])
        k = gconv(x, p["wk"], p["bk"])
        v = gconv(x, p["wv"], p["bv"])
        scores = (q @ k.T) / jnp.sqrt(jnp.float32(q.shape[-1]))
        if attn_bias is not None:
            scores = scores + attn_bias
        attn = jax.nn.softmax(scores, axis=-1)
        attn_out = gconv(attn @ v, p["wo"], p["bo"])

        def ln(h, p=p):
            mu = jnp.mean(h, axis=-1, keepdims=True)
            var = jnp.mean((h - mu) ** 2, axis=-1, keepdims=True)
            return (h - mu) / jnp.sqrt(var + 1e-5) * p["ln_gamma"] + p["ln_beta"]

        h = ln(attn_out) + x
        hid = jnp.maximum(gconv(h, p["w1"], p["b1"]), 0.0)
        x = ln(gconv(hid, p["w2"], p["b2"]))
        attn_bias = attn

    w1, b1 = params["cla1"]
    w2, b2 = params["cla2"]
    fe = jnp.maximum(x @ w1 + b1.reshape(-1), 0.0)
    out = fe @ w2 + b2.reshape(-1)
    return out, fe


# ----------------------------------------------------------------------------
# Deterministic parameter / input construction
# ----------------------------------------------------------------------------
def _lin(k, fan_in, fan_out):
    scale = 1.0 / jnp.sqrt(jnp.float32(fan_in))
    w = jax.random.uniform(k, (fan_in, fan_out), jnp.float32, -scale, scale)
    b = jax.random.uniform(jax.random.fold_in(k, 1), (1, fan_out),
                           jnp.float32, -scale, scale)
    return w, b


def make_layer_params(key, in_feats, d_k, d_v, hidden_size):
    ks = jax.random.split(key, 6)
    wq, bq = _lin(ks[0], in_feats, d_k)
    wk, bk = _lin(ks[1], in_feats, d_k)
    wv, bv = _lin(ks[2], in_feats, d_v)
    wo, bo = _lin(ks[3], d_v, in_feats)
    w1, b1 = _lin(ks[4], in_feats, hidden_size)
    w2, b2 = _lin(ks[5], hidden_size, in_feats)
    return dict(
        wq=wq, bq=bq, wk=wk, bk=bk, wv=wv, bv=bv, wo=wo, bo=bo,
        ln_gamma=jnp.ones((1, in_feats), jnp.float32),
        ln_beta=jnp.zeros((1, in_feats), jnp.float32),
        w1=w1, b1=b1, w2=w2, b2=b2)


def make_hcl_params(key, n_layers, in_feats, d_k, d_v, hidden, num_class,
                    n_path_node):
    ks = jax.random.split(key, n_layers + n_path_node + 2)
    layers = [make_layer_params(ks[i], in_feats, d_k, d_v, hidden)
              for i in range(n_layers)]
    path = [_lin(ks[n_layers + i], in_feats, in_feats)
            for i in range(n_path_node)]
    cla1 = _lin(ks[-2], in_feats, 128)
    cla2 = _lin(ks[-1], 128, num_class)
    return dict(layers=layers, path=path, cla1=cla1, cla2=cla2)


def make_normalized_adjacency(key, n):
    # Deterministic random symmetric graph with self-loops, D^-1/2 A D^-1/2.
    a = jax.random.bernoulli(key, 0.4, (n, n)).astype(jnp.float32)
    a = jnp.maximum(a, a.T)
    a = jnp.maximum(a, jnp.eye(n, dtype=jnp.float32))
    deg = jnp.sum(a, axis=-1)
    d_inv_sqrt = 1.0 / jnp.sqrt(deg)
    return a * d_inv_sqrt[:, None] * d_inv_sqrt[None, :]


if __name__ == "__main__":
    N = 8              # graph nodes
    in_feats = 32
    d_k = 16
    d_v = 16
    hidden = 64
    n_layers = 2       # >1 so the h_attn additive-bias path is exercised
    num_class = 4
    n_paths = 3
    n_path_node = 2

    root = jax.random.PRNGKey(0)
    k_graph, k_x, k_path, k_params = jax.random.split(root, 4)

    a_hat = make_normalized_adjacency(k_graph, N)
    node_emb = jax.random.normal(k_x, (N, in_feats), jnp.float32)
    path_emb = jax.random.normal(k_path, (n_paths, in_feats), jnp.float32)
    params = make_hcl_params(k_params, n_layers, in_feats, d_k, d_v, hidden,
                             num_class, n_path_node)
    path_node_dict = {0: [1, 3, 5], 1: [2, 4], 2: [0, 6, 7]}

    # bf16 MXU operands (default, fast path on v5e/v6e/v7x).
    run_bf16 = jax.jit(lambda a, ne, pe, prm: hcl_forward(
        a, ne, pe, path_node_dict, prm, n_path_node=n_path_node,
        matmul_dtype=jnp.bfloat16))
    # f32 operands everywhere (reference-precision path).
    run_f32 = jax.jit(lambda a, ne, pe, prm: hcl_forward(
        a, ne, pe, path_node_dict, prm, n_path_node=n_path_node,
        matmul_dtype=jnp.float32, exp_dtype=jnp.float32))

    out_bf16, fe_bf16 = run_bf16(a_hat, node_emb, path_emb, params)
    out_f32, fe_f32 = run_f32(a_hat, node_emb, path_emb, params)
    jax.block_until_ready((out_bf16, fe_bf16, out_f32, fe_f32))

    assert out_bf16.shape == (N, num_class) and fe_bf16.shape == (N, 128)
    assert bool(jnp.all(jnp.isfinite(out_bf16)))
    assert bool(jnp.all(jnp.isfinite(fe_bf16)))

    out_ref, fe_ref = hcl_forward_ref(a_hat, node_emb, path_emb,
                                      path_node_dict, params,
                                      n_path_node=n_path_node)

    # f32 kernel path: tight tolerance (only reorder / approx-recip effects).
    assert bool(jnp.allclose(out_f32, out_ref, rtol=5e-3, atol=5e-3)), "out f32"
    assert bool(jnp.allclose(fe_f32, fe_ref, rtol=5e-3, atol=5e-3)), "fe f32"
    # bf16 MXU-operand path: looser tolerance for the downcast operands.
    assert bool(jnp.allclose(out_bf16, out_ref, rtol=5e-2, atol=5e-2)), "out bf16"
    assert bool(jnp.allclose(fe_bf16, fe_ref, rtol=5e-2, atol=5e-2)), "fe bf16"

    print("KERNEL_OK")
</pallas_src>

<mosaic_0001>
module attributes {stable_mosaic.version = 11 : i64} {
  func.func @_hcl_layer_kernel(%arg0: memref<8x8xbf16, #tpu.memory_space<vmem>>, %arg1: memref<8x128xf32, #tpu.memory_space<vmem>>, %arg2: memref<128x384xbf16, #tpu.memory_space<vmem>>, %arg3: memref<128x128xbf16, #tpu.memory_space<vmem>>, %arg4: memref<128x128xbf16, #tpu.memory_space<vmem>>, %arg5: memref<128x128xbf16, #tpu.memory_space<vmem>>, %arg6: memref<8x128xf32, #tpu.memory_space<vmem>>, %arg7: memref<8x128xf32, #tpu.memory_space<vmem>>, %arg8: memref<8x8xf32, #tpu.memory_space<vmem>>) attributes {dimension_semantics = [], scalar_prefetch = 0 : i64, scratch_operands = 0 : i64, tpu.core_type = #tpu.core_type<tc>} {
    %c0 = arith.constant 0 : index
    %c0_0 = arith.constant 0 : index
    %0 = vector.load %arg0[%c0, %c0_0] : memref<8x8xbf16, #tpu.memory_space<vmem>>, vector<8x8xbf16>
    %c0_1 = arith.constant 0 : index
    %c0_2 = arith.constant 0 : index
    %1 = vector.load %arg1[%c0_1, %c0_2] : memref<8x128xf32, #tpu.memory_space<vmem>>, vector<8x128xf32>
    %c0_3 = arith.constant 0 : index
    %c0_4 = arith.constant 0 : index
    %2 = vector.load %arg6[%c0_3, %c0_4] : memref<8x128xf32, #tpu.memory_space<vmem>>, vector<8x128xf32>
    %3 = arith.truncf %1 : vector<8x128xf32> to vector<8x128xbf16>
    %cst = arith.constant dense<0.000000e+00> : vector<8x128xf32>
    %4 = tpu.matmul %0, %3, %cst {dimension_numbers = #tpu.dot_dimension_numbers<[1], [0], [0], [1], [0, 0, 1, 1], [], []>} : vector<8x8xbf16>, vector<8x128xbf16>, vector<8x128xf32> -> vector<8x128xf32>
    %c0_5 = arith.constant 0 : index
    %c0_6 = arith.constant 0 : index
    %5 = vector.load %arg2[%c0_5, %c0_6] : memref<128x384xbf16, #tpu.memory_space<vmem>>, vector<128x384xbf16>
    %6 = arith.truncf %4 : vector<8x128xf32> to vector<8x128xbf16>
    %cst_7 = arith.constant dense<0.000000e+00> : vector<8x384xf32>
    %7 = tpu.matmul %6, %5, %cst_7 {dimension_numbers = #tpu.dot_dimension_numbers<[1], [0], [0], [1], [0, 0, 1, 1], [], []>} : vector<8x128xbf16>, vector<128x384xbf16>, vector<8x384xf32> -> vector<8x384xf32>
    %8 = vector.extract_strided_slice %7 {offsets = [0, 0], sizes = [8, 128], strides = [1, 1]} : vector<8x384xf32> to vector<8x128xf32>
    %9 = vector.extract_strided_slice %2 {offsets = [0, 0], sizes = [1, 128], strides = [1, 1]} : vector<8x128xf32> to vector<1x128xf32>
    %10 = vector.broadcast %9 : vector<1x128xf32> to vector<8x128xf32>
    %11 = arith.addf %8, %10 : vector<8x128xf32>
    %12 = vector.extract_strided_slice %7 {offsets = [0, 128], sizes = [8, 128], strides = [1, 1]} : vector<8x384xf32> to vector<8x128xf32>
    %13 = vector.extract_strided_slice %2 {offsets = [1, 0], sizes = [1, 128], strides = [1, 1]} : vector<8x128xf32> to vector<1x128xf32>
    %14 = vector.broadcast %13 : vector<1x128xf32> to vector<8x128xf32>
    %15 = arith.addf %12, %14 : vector<8x128xf32>
    %16 = vector.extract_strided_slice %7 {offsets = [0, 256], sizes = [8, 128], strides = [1, 1]} : vector<8x384xf32> to vector<8x128xf32>
    %17 = vector.extract_strided_slice %2 {offsets = [2, 0], sizes = [1, 128], strides = [1, 1]} : vector<8x128xf32> to vector<1x128xf32>
    %18 = vector.broadcast %17 : vector<1x128xf32> to vector<8x128xf32>
    %19 = arith.addf %16, %18 : vector<8x128xf32>
    %20 = arith.truncf %11 : vector<8x128xf32> to vector<8x128xbf16>
    %21 = arith.truncf %15 : vector<8x128xf32> to vector<8x128xbf16>
    %cst_8 = arith.constant dense<0.000000e+00> : vector<8x8xf32>
    %22 = tpu.matmul %20, %21, %cst_8 {dimension_numbers = #tpu.dot_dimension_numbers<[1], [1], [0], [0], [0, 0, 1, 0], [], []>} : vector<8x128xbf16>, vector<8x128xbf16>, vector<8x8xf32> -> vector<8x8xf32>
    %cst_9 = arith.constant dense<0xFF800000> : vector<8xf32>
    %23 = vector.multi_reduction <maximumf>, %22, %cst_9 [1] : vector<8x8xf32> to vector<8xf32>
    %24 = vector.shape_cast %23 : vector<8xf32> to vector<8x1xf32>
    %25 = vector.broadcast %24 : vector<8x1xf32> to vector<8x8xf32>
    %26 = arith.subf %22, %25 : vector<8x8xf32>
    %27 = arith.truncf %26 : vector<8x8xf32> to vector<8x8xbf16>
    %28 = math.exp %27 : vector<8x8xbf16>
    %29 = arith.extf %28 : vector<8x8xbf16> to vector<8x8xf32>
    %cst_10 = arith.constant dense<0.000000e+00> : vector<8xf32>
    %30 = vector.multi_reduction <add>, %29, %cst_10 [1] : vector<8x8xf32> to vector<8xf32>
    %31 = vector.shape_cast %30 : vector<8xf32> to vector<8x1xf32>
    %32 = tpu.reciprocal %31 {approx = true} : vector<8x1xf32> -> vector<8x1xf32>
    %33 = arith.truncf %19 : vector<8x128xf32> to vector<8x128xbf16>
    %cst_11 = arith.constant dense<0.000000e+00> : vector<8x128xf32>
    %34 = tpu.matmul %28, %33, %cst_11 {dimension_numbers = #tpu.dot_dimension_numbers<[1], [0], [0], [1], [0, 0, 1, 1], [], []>} : vector<8x8xbf16>, vector<8x128xbf16>, vector<8x128xf32> -> vector<8x128xf32>
    %35 = vector.broadcast %32 : vector<8x1xf32> to vector<8x128xf32>
    %36 = arith.mulf %34, %35 : vector<8x128xf32>
    %37 = arith.extf %28 : vector<8x8xbf16> to vector<8x8xf32>
    %38 = vector.broadcast %32 : vector<8x1xf32> to vector<8x8xf32>
    %39 = arith.mulf %37, %38 : vector<8x8xf32>
    %c0_12 = arith.constant 0 : index
    %c0_13 = arith.constant 0 : index
    %40 = vector.load %arg8[%c0_12, %c0_13] : memref<8x8xf32, #tpu.memory_space<vmem>>, vector<8x8xf32>
    tpu.vector_store %arg8[%c0_12, %c0_13], %39 {strides = array<i32>} : memref<8x8xf32, #tpu.memory_space<vmem>>, vector<8x8xf32>,
    %41 = vector.extract_strided_slice %2 {offsets = [3, 0], sizes = [1, 128], strides = [1, 1]} : vector<8x128xf32> to vector<1x128xf32>
    %c0_14 = arith.constant 0 : index
    %c0_15 = arith.constant 0 : index
    %42 = vector.load %arg3[%c0_14, %c0_15] : memref<128x128xbf16, #tpu.memory_space<vmem>>, vector<128x128xbf16>
    %43 = arith.truncf %36 : vector<8x128xf32> to vector<8x128xbf16>
    %cst_16 = arith.constant dense<0.000000e+00> : vector<8x128xf32>
    %44 = tpu.matmul %0, %43, %cst_16 {dimension_numbers = #tpu.dot_dimension_numbers<[1], [0], [0], [1], [0, 0, 1, 1], [], []>} : vector<8x8xbf16>, vector<8x128xbf16>, vector<8x128xf32> -> vector<8x128xf32>
    %45 = arith.truncf %44 : vector<8x128xf32> to vector<8x128xbf16>
    %cst_17 = arith.constant dense<0.000000e+00> : vector<8x128xf32>
    %46 = tpu.matmul %45, %42, %cst_17 {dimension_numbers = #tpu.dot_dimension_numbers<[1], [0], [0], [1], [0, 0, 1, 1], [], []>} : vector<8x128xbf16>, vector<128x128xbf16>, vector<8x128xf32> -> vector<8x128xf32>
    %47 = vector.broadcast %41 : vector<1x128xf32> to vector<8x128xf32>
    %48 = arith.addf %46, %47 : vector<8x128xf32>
    %49 = vector.extract_strided_slice %2 {offsets = [6, 0], sizes = [1, 128], strides = [1, 1]} : vector<8x128xf32> to vector<1x128xf32>
    %50 = vector.extract_strided_slice %2 {offsets = [7, 0], sizes = [1, 128], strides = [1, 1]} : vector<8x128xf32> to vector<1x128xf32>
    %51 = tpu.iota {dimensions = array<i32: 1>} : vector<1x128xi32>
    %c32_i32 = arith.constant 32 : i32
    %52 = vector.broadcast %c32_i32 : i32 to vector<1x128xi32>
    %53 = arith.cmpi slt, %51, %52 : vector<1x128xi32>
    %cst_18 = arith.constant dense<0.000000e+00> : vector<8xf32>
    %54 = vector.multi_reduction <add>, %48, %cst_18 [1] : vector<8x128xf32> to vector<8xf32>
    %55 = vector.shape_cast %54 : vector<8xf32> to vector<8x1xf32>
    %cst_19 = arith.constant 3.125000e-02 : f32
    %56 = vector.broadcast %cst_19 : f32 to vector<8x1xf32>
    %57 = arith.mulf %55, %56 : vector<8x1xf32>
    %58 = vector.broadcast %57 : vector<8x1xf32> to vector<8x128xf32>
    %59 = arith.subf %48, %58 : vector<8x128xf32>
    %cst_20 = arith.constant 0.000000e+00 : f32
    %60 = vector.shape_cast %53 : vector<1x128xi1> to vector<1x128xi1>
    %61 = vector.broadcast %60 : vector<1x128xi1> to vector<8x128xi1>
    %62 = vector.broadcast %cst_20 : f32 to vector<8x128xf32>
    %63 = arith.select %61, %59, %62 : vector<8x128xi1>, vector<8x128xf32>
    %64 = arith.mulf %63, %63 : vector<8x128xf32>
    %cst_21 = arith.constant dense<0.000000e+00> : vector<8xf32>
    %65 = vector.multi_reduction <add>, %64, %cst_21 [1] : vector<8x128xf32> to vector<8xf32>
    %66 = vector.shape_cast %65 : vector<8xf32> to vector<8x1xf32>
    %cst_22 = arith.constant 3.125000e-02 : f32
    %67 = vector.broadcast %cst_22 : f32 to vector<8x1xf32>
    %68 = arith.mulf %66, %67 : vector<8x1xf32>
    %cst_23 = arith.constant 9.99999974E-6 : f32
    %69 = vector.broadcast %cst_23 : f32 to vector<8x1xf32>
    %70 = arith.addf %68, %69 : vector<8x1xf32>
    %71 = math.rsqrt %70 : vector<8x1xf32>
    %72 = vector.broadcast %71 : vector<8x1xf32> to vector<8x128xf32>
    %73 = arith.mulf %63, %72 : vector<8x128xf32>
    %74 = vector.broadcast %49 : vector<1x128xf32> to vector<8x128xf32>
    %75 = arith.mulf %73, %74 : vector<8x128xf32>
    %76 = vector.broadcast %50 : vector<1x128xf32> to vector<8x128xf32>
    %77 = arith.addf %75, %76 : vector<8x128xf32>
    %78 = arith.addf %77, %1 : vector<8x128xf32>
    %79 = vector.extract_strided_slice %2 {offsets = [4, 0], sizes = [1, 128], strides = [1, 1]} : vector<8x128xf32> to vector<1x128xf32>
    %c0_24 = arith.constant 0 : index
    %c0_25 = arith.constant 0 : index
    %80 = vector.load %arg4[%c0_24, %c0_25] : memref<128x128xbf16, #tpu.memory_space<vmem>>, vector<128x128xbf16>
    %81 = arith.truncf %78 : vector<8x128xf32> to vector<8x128xbf16>
    %cst_26 = arith.constant dense<0.000000e+00> : vector<8x128xf32>
    %82 = tpu.matmul %0, %81, %cst_26 {dimension_numbers = #tpu.dot_dimension_numbers<[1], [0], [0], [1], [0, 0, 1, 1], [], []>} : vector<8x8xbf16>, vector<8x128xbf16>, vector<8x128xf32> -> vector<8x128xf32>
    %83 = arith.truncf %82 : vector<8x128xf32> to vector<8x128xbf16>
    %cst_27 = arith.constant dense<0.000000e+00> : vector<8x128xf32>
    %84 = tpu.matmul %83, %80, %cst_27 {dimension_numbers = #tpu.dot_dimension_numbers<[1], [0], [0], [1], [0, 0, 1, 1], [], []>} : vector<8x128xbf16>, vector<128x128xbf16>, vector<8x128xf32> -> vector<8x128xf32>
    %85 = vector.broadcast %79 : vector<1x128xf32> to vector<8x128xf32>
    %86 = arith.addf %84, %85 : vector<8x128xf32>
    %cst_28 = arith.constant 0.000000e+00 : f32
    %87 = vector.broadcast %cst_28 : f32 to vector<8x128xf32>
    %88 = arith.maximumf %86, %87 : vector<8x128xf32>
    %89 = vector.extract_strided_slice %2 {offsets = [5, 0], sizes = [1, 128], strides = [1, 1]} : vector<8x128xf32> to vector<1x128xf32>
    %c0_29 = arith.constant 0 : index
    %c0_30 = arith.constant 0 : index
    %90 = vector.load %arg5[%c0_29, %c0_30] : memref<128x128xbf16, #tpu.memory_space<vmem>>, vector<128x128xbf16>
    %91 = arith.truncf %88 : vector<8x128xf32> to vector<8x128xbf16>
    %cst_31 = arith.constant dense<0.000000e+00> : vector<8x128xf32>
    %92 = tpu.matmul %91, %90, %cst_31 {dimension_numbers = #tpu.dot_dimension_numbers<[1], [0], [0], [1], [0, 0, 1, 1], [], []>} : vector<8x128xbf16>, vector<128x128xbf16>, vector<8x128xf32> -> vector<8x128xf32>
    %93 = arith.truncf %92 : vector<8x128xf32> to vector<8x128xbf16>
    %cst_32 = arith.constant dense<0.000000e+00> : vector<8x128xf32>
    %94 = tpu.matmul %0, %93, %cst_32 {dimension_numbers = #tpu.dot_dimension_numbers<[1], [0], [0], [1], [0, 0, 1, 1], [], []>} : vector<8x8xbf16>, vector<8x128xbf16>, vector<8x128xf32> -> vector<8x128xf32>
    %95 = vector.broadcast %89 : vector<1x128xf32> to vector<8x128xf32>
    %96 = arith.addf %94, %95 : vector<8x128xf32>
    %cst_33 = arith.constant dense<0.000000e+00> : vector<8xf32>
    %97 = vector.multi_reduction <add>, %96, %cst_33 [1] : vector<8x128xf32> to vector<8xf32>
    %98 = vector.shape_cast %97 : vector<8xf32> to vector<8x1xf32>
    %cst_34 = arith.constant 3.125000e-02 : f32
    %99 = vector.broadcast %cst_34 : f32 to vector<8x1xf32>
    %100 = arith.mulf %98, %99 : vector<8x1xf32>
    %101 = vector.broadcast %100 : vector<8x1xf32> to vector<8x128xf32>
    %102 = arith.subf %96, %101 : vector<8x128xf32>
    %cst_35 = arith.constant 0.000000e+00 : f32
    %103 = vector.shape_cast %53 : vector<1x128xi1> to vector<1x128xi1>
    %104 = vector.broadcast %103 : vector<1x128xi1> to vector<8x128xi1>
    %105 = vector.broadcast %cst_35 : f32 to vector<8x128xf32>
    %106 = arith.select %104, %102, %105 : vector<8x128xi1>, vector<8x128xf32>
    %107 = arith.mulf %106, %106 : vector<8x128xf32>
    %cst_36 = arith.constant dense<0.000000e+00> : vector<8xf32>
    %108 = vector.multi_reduction <add>, %107, %cst_36 [1] : vector<8x128xf32> to vector<8xf32>
    %109 = vector.shape_cast %108 : vector<8xf32> to vector<8x1xf32>
    %cst_37 = arith.constant 3.125000e-02 : f32
    %110 = vector.broadcast %cst_37 : f32 to vector<8x1xf32>
    %111 = arith.mulf %109, %110 : vector<8x1xf32>
    %cst_38 = arith.constant 9.99999974E-6 : f32
    %112 = vector.broadcast %cst_38 : f32 to vector<8x1xf32>
    %113 = arith.addf %111, %112 : vector<8x1xf32>
    %114 = math.rsqrt %113 : vector<8x1xf32>
    %115 = vector.broadcast %114 : vector<8x1xf32> to vector<8x128xf32>
    %116 = arith.mulf %106, %115 : vector<8x128xf32>
    %117 = vector.broadcast %49 : vector<1x128xf32> to vector<8x128xf32>
    %118 = arith.mulf %116, %117 : vector<8x128xf32>
    %119 = vector.broadcast %50 : vector<1x128xf32> to vector<8x128xf32>
    %120 = arith.addf %118, %119 : vector<8x128xf32>
    %c0_39 = arith.constant 0 : index
    %c0_40 = arith.constant 0 : index
    %121 = vector.load %arg7[%c0_39, %c0_40] : memref<8x128xf32, #tpu.memory_space<vmem>>, vector<8x128xf32>
    tpu.vector_store %arg7[%c0_39, %c0_40], %120 {strides = array<i32>} : memref<8x128xf32, #tpu.memory_space<vmem>>, vector<8x128xf32>,
    return
  }
}

module attributes {stable_mosaic.version = 11 : i64} {
  func.func @_hcl_layer_kernel(%arg0: memref<8x8xbf16, #tpu.memory_space<vmem>>, %arg1: memref<8x128xf32, #tpu.memory_space<vmem>>, %arg2: memref<128x384xbf16, #tpu.memory_space<vmem>>, %arg3: memref<128x128xbf16, #tpu.memory_space<vmem>>, %arg4: memref<128x128xbf16, #tpu.memory_space<vmem>>, %arg5: memref<128x128xbf16, #tpu.memory_space<vmem>>, %arg6: memref<8x128xf32, #tpu.memory_space<vmem>>, %arg7: memref<8x8xf32, #tpu.memory_space<vmem>>, %arg8: memref<8x128xf32, #tpu.memory_space<vmem>>) attributes {dimension_semantics = [], scalar_prefetch = 0 : i64, scratch_operands = 0 : i64, tpu.core_type = #tpu.core_type<tc>} {
    %c0 = arith.constant 0 : index
    %c0_0 = arith.constant 0 : index
    %0 = vector.load %arg0[%c0, %c0_0] : memref<8x8xbf16, #tpu.memory_space<vmem>>, vector<8x8xbf16>
    %c0_1 = arith.constant 0 : index
    %c0_2 = arith.constant 0 : index
    %1 = vector.load %arg1[%c0_1, %c0_2] : memref<8x128xf32, #tpu.memory_space<vmem>>, vector<8x128xf32>
    %c0_3 = arith.constant 0 : index
    %c0_4 = arith.constant 0 : index
    %2 = vector.load %arg6[%c0_3, %c0_4] : memref<8x128xf32, #tpu.memory_space<vmem>>, vector<8x128xf32>
    %3 = arith.truncf %1 : vector<8x128xf32> to vector<8x128xbf16>
    %cst = arith.constant dense<0.000000e+00> : vector<8x128xf32>
    %4 = tpu.matmul %0, %3, %cst {dimension_numbers = #tpu.dot_dimension_numbers<[1], [0], [0], [1], [0, 0, 1, 1], [], []>} : vector<8x8xbf16>, vector<8x128xbf16>, vector<8x128xf32> -> vector<8x128xf32>
    %c0_5 = arith.constant 0 : index
    %c0_6 = arith.constant 0 : index
    %5 = vector.load %arg2[%c0_5, %c0_6] : memref<128x384xbf16, #tpu.memory_space<vmem>>, vector<128x384xbf16>
    %6 = arith.truncf %4 : vector<8x128xf32> to vector<8x128xbf16>
    %cst_7 = arith.constant dense<0.000000e+00> : vector<8x384xf32>
    %7 = tpu.matmul %6, %5, %cst_7 {dimension_numbers = #tpu.dot_dimension_numbers<[1], [0], [0], [1], [0, 0, 1, 1], [], []>} : vector<8x128xbf16>, vector<128x384xbf16>, vector<8x384xf32> -> vector<8x384xf32>
    %8 = vector.extract_strided_slice %7 {offsets = [0, 0], sizes = [8, 128], strides = [1, 1]} : vector<8x384xf32> to vector<8x128xf32>
    %9 = vector.extract_strided_slice %2 {offsets = [0, 0], sizes = [1, 128], strides = [1, 1]} : vector<8x128xf32> to vector<1x128xf32>
    %10 = vector.broadcast %9 : vector<1x128xf32> to vector<8x128xf32>
    %11 = arith.addf %8, %10 : vector<8x128xf32>
    %12 = vector.extract_strided_slice %7 {offsets = [0, 128], sizes = [8, 128], strides = [1, 1]} : vector<8x384xf32> to vector<8x128xf32>
    %13 = vector.extract_strided_slice %2 {offsets = [1, 0], sizes = [1, 128], strides = [1, 1]} : vector<8x128xf32> to vector<1x128xf32>
    %14 = vector.broadcast %13 : vector<1x128xf32> to vector<8x128xf32>
    %15 = arith.addf %12, %14 : vector<8x128xf32>
    %16 = vector.extract_strided_slice %7 {offsets = [0, 256], sizes = [8, 128], strides = [1, 1]} : vector<8x384xf32> to vector<8x128xf32>
    %17 = vector.extract_strided_slice %2 {offsets = [2, 0], sizes = [1, 128], strides = [1, 1]} : vector<8x128xf32> to vector<1x128xf32>
    %18 = vector.broadcast %17 : vector<1x128xf32> to vector<8x128xf32>
    %19 = arith.addf %16, %18 : vector<8x128xf32>
    %20 = arith.truncf %11 : vector<8x128xf32> to vector<8x128xbf16>
    %21 = arith.truncf %15 : vector<8x128xf32> to vector<8x128xbf16>
    %cst_8 = arith.constant dense<0.000000e+00> : vector<8x8xf32>
    %22 = tpu.matmul %20, %21, %cst_8 {dimension_numbers = #tpu.dot_dimension_numbers<[1], [1], [0], [0], [0, 0, 1, 0], [], []>} : vector<8x128xbf16>, vector<8x128xbf16>, vector<8x8xf32> -> vector<8x8xf32>
    %c0_9 = arith.constant 0 : index
    %c0_10 = arith.constant 0 : index
    %23 = vector.load %arg7[%c0_9, %c0_10] : memref<8x8xf32, #tpu.memory_space<vmem>>, vector<8x8xf32>
    %24 = arith.addf %22, %23 : vector<8x8xf32>
    %cst_11 = arith.constant dense<0xFF800000> : vector<8xf32>
    %25 = vector.multi_reduction <maximumf>, %24, %cst_11 [1] : vector<8x8xf32> to vector<8xf32>
    %26 = vector.shape_cast %25 : vector<8xf32> to vector<8x1xf32>
    %27 = vector.broadcast %26 : vector<8x1xf32> to vector<8x8xf32>
    %28 = arith.subf %24, %27 : vector<8x8xf32>
    %29 = arith.truncf %28 : vector<8x8xf32> to vector<8x8xbf16>
    %30 = math.exp %29 : vector<8x8xbf16>
    %31 = arith.extf %30 : vector<8x8xbf16> to vector<8x8xf32>
    %cst_12 = arith.constant dense<0.000000e+00> : vector<8xf32>
    %32 = vector.multi_reduction <add>, %31, %cst_12 [1] : vector<8x8xf32> to vector<8xf32>
    %33 = vector.shape_cast %32 : vector<8xf32> to vector<8x1xf32>
    %34 = tpu.reciprocal %33 {approx = true} : vector<8x1xf32> -> vector<8x1xf32>
    %35 = arith.truncf %19 : vector<8x128xf32> to vector<8x128xbf16>
    %cst_13 = arith.constant dense<0.000000e+00> : vector<8x128xf32>
    %36 = tpu.matmul %30, %35, %cst_13 {dimension_numbers = #tpu.dot_dimension_numbers<[1], [0], [0], [1], [0, 0, 1, 1], [], []>} : vector<8x8xbf16>, vector<8x128xbf16>, vector<8x128xf32> -> vector<8x128xf32>
    %37 = vector.broadcast %34 : vector<8x1xf32> to vector<8x128xf32>
    %38 = arith.mulf %36, %37 : vector<8x128xf32>
    %39 = vector.extract_strided_slice %2 {offsets = [3, 0], sizes = [1, 128], strides = [1, 1]} : vector<8x128xf32> to vector<1x128xf32>
    %c0_14 = arith.constant 0 : index
    %c0_15 = arith.constant 0 : index
    %40 = vector.load %arg3[%c0_14, %c0_15] : memref<128x128xbf16, #tpu.memory_space<vmem>>, vector<128x128xbf16>
    %41 = arith.truncf %38 : vector<8x128xf32> to vector<8x128xbf16>
    %cst_16 = arith.constant dense<0.000000e+00> : vector<8x128xf32>
    %42 = tpu.matmul %0, %41, %cst_16 {dimension_numbers = #tpu.dot_dimension_numbers<[1], [0], [0], [1], [0, 0, 1, 1], [], []>} : vector<8x8xbf16>, vector<8x128xbf16>, vector<8x128xf32> -> vector<8x128xf32>
    %43 = arith.truncf %42 : vector<8x128xf32> to vector<8x128xbf16>
    %cst_17 = arith.constant dense<0.000000e+00> : vector<8x128xf32>
    %44 = tpu.matmul %43, %40, %cst_17 {dimension_numbers = #tpu.dot_dimension_numbers<[1], [0], [0], [1], [0, 0, 1, 1], [], []>} : vector<8x128xbf16>, vector<128x128xbf16>, vector<8x128xf32> -> vector<8x128xf32>
    %45 = vector.broadcast %39 : vector<1x128xf32> to vector<8x128xf32>
    %46 = arith.addf %44, %45 : vector<8x128xf32>
    %47 = vector.extract_strided_slice %2 {offsets = [6, 0], sizes = [1, 128], strides = [1, 1]} : vector<8x128xf32> to vector<1x128xf32>
    %48 = vector.extract_strided_slice %2 {offsets = [7, 0], sizes = [1, 128], strides = [1, 1]} : vector<8x128xf32> to vector<1x128xf32>
    %49 = tpu.iota {dimensions = array<i32: 1>} : vector<1x128xi32>
    %c32_i32 = arith.constant 32 : i32
    %50 = vector.broadcast %c32_i32 : i32 to vector<1x128xi32>
    %51 = arith.cmpi slt, %49, %50 : vector<1x128xi32>
    %cst_18 = arith.constant dense<0.000000e+00> : vector<8xf32>
    %52 = vector.multi_reduction <add>, %46, %cst_18 [1] : vector<8x128xf32> to vector<8xf32>
    %53 = vector.shape_cast %52 : vector<8xf32> to vector<8x1xf32>
    %cst_19 = arith.constant 3.125000e-02 : f32
    %54 = vector.broadcast %cst_19 : f32 to vector<8x1xf32>
    %55 = arith.mulf %53, %54 : vector<8x1xf32>
    %56 = vector.broadcast %55 : vector<8x1xf32> to vector<8x128xf32>
    %57 = arith.subf %46, %56 : vector<8x128xf32>
    %cst_20 = arith.constant 0.000000e+00 : f32
    %58 = vector.shape_cast %51 : vector<1x128xi1> to vector<1x128xi1>
    %59 = vector.broadcast %58 : vector<1x128xi1> to vector<8x128xi1>
    %60 = vector.broadcast %cst_20 : f32 to vector<8x128xf32>
    %61 = arith.select %59, %57, %60 : vector<8x128xi1>, vector<8x128xf32>
    %62 = arith.mulf %61, %61 : vector<8x128xf32>
    %cst_21 = arith.constant dense<0.000000e+00> : vector<8xf32>
    %63 = vector.multi_reduction <add>, %62, %cst_21 [1] : vector<8x128xf32> to vector<8xf32>
    %64 = vector.shape_cast %63 : vector<8xf32> to vector<8x1xf32>
    %cst_22 = arith.constant 3.125000e-02 : f32
    %65 = vector.broadcast %cst_22 : f32 to vector<8x1xf32>
    %66 = arith.mulf %64, %65 : vector<8x1xf32>
    %cst_23 = arith.constant 9.99999974E-6 : f32
    %67 = vector.broadcast %cst_23 : f32 to vector<8x1xf32>
    %68 = arith.addf %66, %67 : vector<8x1xf32>
    %69 = math.rsqrt %68 : vector<8x1xf32>
    %70 = vector.broadcast %69 : vector<8x1xf32> to vector<8x128xf32>
    %71 = arith.mulf %61, %70 : vector<8x128xf32>
    %72 = vector.broadcast %47 : vector<1x128xf32> to vector<8x128xf32>
    %73 = arith.mulf %71, %72 : vector<8x128xf32>
    %74 = vector.broadcast %48 : vector<1x128xf32> to vector<8x128xf32>
    %75 = arith.addf %73, %74 : vector<8x128xf32>
    %76 = arith.addf %75, %1 : vector<8x128xf32>
    %77 = vector.extract_strided_slice %2 {offsets = [4, 0], sizes = [1, 128], strides = [1, 1]} : vector<8x128xf32> to vector<1x128xf32>
    %c0_24 = arith.constant 0 : index
    %c0_25 = arith.constant 0 : index
    %78 = vector.load %arg4[%c0_24, %c0_25] : memref<128x128xbf16, #tpu.memory_space<vmem>>, vector<128x128xbf16>
    %79 = arith.truncf %76 : vector<8x128xf32> to vector<8x128xbf16>
    %cst_26 = arith.constant dense<0.000000e+00> : vector<8x128xf32>
    %80 = tpu.matmul %0, %79, %cst_26 {dimension_numbers = #tpu.dot_dimension_numbers<[1], [0], [0], [1], [0, 0, 1, 1], [], []>} : vector<8x8xbf16>, vector<8x128xbf16>, vector<8x128xf32> -> vector<8x128xf32>
    %81 = arith.truncf %80 : vector<8x128xf32> to vector<8x128xbf16>
    %cst_27 = arith.constant dense<0.000000e+00> : vector<8x128xf32>
    %82 = tpu.matmul %81, %78, %cst_27 {dimension_numbers = #tpu.dot_dimension_numbers<[1], [0], [0], [1], [0, 0, 1, 1], [], []>} : vector<8x128xbf16>, vector<128x128xbf16>, vector<8x128xf32> -> vector<8x128xf32>
    %83 = vector.broadcast %77 : vector<1x128xf32> to vector<8x128xf32>
    %84 = arith.addf %82, %83 : vector<8x128xf32>
    %cst_28 = arith.constant 0.000000e+00 : f32
    %85 = vector.broadcast %cst_28 : f32 to vector<8x128xf32>
    %86 = arith.maximumf %84, %85 : vector<8x128xf32>
    %87 = vector.extract_strided_slice %2 {offsets = [5, 0], sizes = [1, 128], strides = [1, 1]} : vector<8x128xf32> to vector<1x128xf32>
    %c0_29 = arith.constant 0 : index
    %c0_30 = arith.constant 0 : index
    %88 = vector.load %arg5[%c0_29, %c0_30] : memref<128x128xbf16, #tpu.memory_space<vmem>>, vector<128x128xbf16>
    %89 = arith.truncf %86 : vector<8x128xf32> to vector<8x128xbf16>
    %cst_31 = arith.constant dense<0.000000e+00> : vector<8x128xf32>
    %90 = tpu.matmul %89, %88, %cst_31 {dimension_numbers = #tpu.dot_dimension_numbers<[1], [0], [0], [1], [0, 0, 1, 1], [], []>} : vector<8x128xbf16>, vector<128x128xbf16>, vector<8x128xf32> -> vector<8x128xf32>
    %91 = arith.truncf %90 : vector<8x128xf32> to vector<8x128xbf16>
    %cst_32 = arith.constant dense<0.000000e+00> : vector<8x128xf32>
    %92 = tpu.matmul %0, %91, %cst_32 {dimension_numbers = #tpu.dot_dimension_numbers<[1], [0], [0], [1], [0, 0, 1, 1], [], []>} : vector<8x8xbf16>, vector<8x128xbf16>, vector<8x128xf32> -> vector<8x128xf32>
    %93 = vector.broadcast %87 : vector<1x128xf32> to vector<8x128xf32>
    %94 = arith.addf %92, %93 : vector<8x128xf32>
    %cst_33 = arith.constant dense<0.000000e+00> : vector<8xf32>
    %95 = vector.multi_reduction <add>, %94, %cst_33 [1] : vector<8x128xf32> to vector<8xf32>
    %96 = vector.shape_cast %95 : vector<8xf32> to vector<8x1xf32>
    %cst_34 = arith.constant 3.125000e-02 : f32
    %97 = vector.broadcast %cst_34 : f32 to vector<8x1xf32>
    %98 = arith.mulf %96, %97 : vector<8x1xf32>
    %99 = vector.broadcast %98 : vector<8x1xf32> to vector<8x128xf32>
    %100 = arith.subf %94, %99 : vector<8x128xf32>
    %cst_35 = arith.constant 0.000000e+00 : f32
    %101 = vector.shape_cast %51 : vector<1x128xi1> to vector<1x128xi1>
    %102 = vector.broadcast %101 : vector<1x128xi1> to vector<8x128xi1>
    %103 = vector.broadcast %cst_35 : f32 to vector<8x128xf32>
    %104 = arith.select %102, %100, %103 : vector<8x128xi1>, vector<8x128xf32>
    %105 = arith.mulf %104, %104 : vector<8x128xf32>
    %cst_36 = arith.constant dense<0.000000e+00> : vector<8xf32>
    %106 = vector.multi_reduction <add>, %105, %cst_36 [1] : vector<8x128xf32> to vector<8xf32>
    %107 = vector.shape_cast %106 : vector<8xf32> to vector<8x1xf32>
    %cst_37 = arith.constant 3.125000e-02 : f32
    %108 = vector.broadcast %cst_37 : f32 to vector<8x1xf32>
    %109 = arith.mulf %107, %108 : vector<8x1xf32>
    %cst_38 = arith.constant 9.99999974E-6 : f32
    %110 = vector.broadcast %cst_38 : f32 to vector<8x1xf32>
    %111 = arith.addf %109, %110 : vector<8x1xf32>
    %112 = math.rsqrt %111 : vector<8x1xf32>
    %113 = vector.broadcast %112 : vector<8x1xf32> to vector<8x128xf32>
    %114 = arith.mulf %104, %113 : vector<8x128xf32>
    %115 = vector.broadcast %47 : vector<1x128xf32> to vector<8x128xf32>
    %116 = arith.mulf %114, %115 : vector<8x128xf32>
    %117 = vector.broadcast %48 : vector<1x128xf32> to vector<8x128xf32>
    %118 = arith.addf %116, %117 : vector<8x128xf32>
    %c0_39 = arith.constant 0 : index
    %c0_40 = arith.constant 0 : index
    %119 = vector.load %arg8[%c0_39, %c0_40] : memref<8x128xf32, #tpu.memory_space<vmem>>, vector<8x128xf32>
    tpu.vector_store %arg8[%c0_39, %c0_40], %118 {strides = array<i32>} : memref<8x128xf32, #tpu.memory_space<vmem>>, vector<8x128xf32>,
    return
  }
}

module attributes {stable_mosaic.version = 11 : i64} {
  func.func @_classifier_kernel(%arg0: memref<8x128xf32, #tpu.memory_space<vmem>>, %arg1: memref<128x128xbf16, #tpu.memory_space<vmem>>, %arg2: memref<128x128xbf16, #tpu.memory_space<vmem>>, %arg3: memref<2x128xf32, #tpu.memory_space<vmem>>, %arg4: memref<8x128xf32, #tpu.memory_space<vmem>>, %arg5: memref<8x128xf32, #tpu.memory_space<vmem>>) attributes {dimension_semantics = [], scalar_prefetch = 0 : i64, scratch_operands = 0 : i64, tpu.core_type = #tpu.core_type<tc>} {
    %c0 = arith.constant 0 : index
    %c0_0 = arith.constant 0 : index
    %0 = vector.load %arg3[%c0, %c0_0] : memref<2x128xf32, #tpu.memory_space<vmem>>, vector<2x128xf32>
    %c0_1 = arith.constant 0 : index
    %c0_2 = arith.constant 0 : index
    %1 = vector.load %arg0[%c0_1, %c0_2] : memref<8x128xf32, #tpu.memory_space<vmem>>, vector<8x128xf32>
    %c0_3 = arith.constant 0 : index
    %c0_4 = arith.constant 0 : index
    %2 = vector.load %arg1[%c0_3, %c0_4] : memref<128x128xbf16, #tpu.memory_space<vmem>>, vector<128x128xbf16>
    %3 = arith.truncf %1 : vector<8x128xf32> to vector<8x128xbf16>
    %cst = arith.constant dense<0.000000e+00> : vector<8x128xf32>
    %4 = tpu.matmul %3, %2, %cst {dimension_numbers = #tpu.dot_dimension_numbers<[1], [0], [0], [1], [0, 0, 1, 1], [], []>} : vector<8x128xbf16>, vector<128x128xbf16>, vector<8x128xf32> -> vector<8x128xf32>
    %5 = vector.extract_strided_slice %0 {offsets = [0, 0], sizes = [1, 128], strides = [1, 1]} : vector<2x128xf32> to vector<1x128xf32>
    %6 = vector.broadcast %5 : vector<1x128xf32> to vector<8x128xf32>
    %7 = arith.addf %4, %6 : vector<8x128xf32>
    %cst_5 = arith.constant 0.000000e+00 : f32
    %8 = vector.broadcast %cst_5 : f32 to vector<8x128xf32>
    %9 = arith.maximumf %7, %8 : vector<8x128xf32>
    %c0_6 = arith.constant 0 : index
    %c0_7 = arith.constant 0 : index
    %10 = vector.load %arg4[%c0_6, %c0_7] : memref<8x128xf32, #tpu.memory_space<vmem>>, vector<8x128xf32>
    tpu.vector_store %arg4[%c0_6, %c0_7], %9 {strides = array<i32>} : memref<8x128xf32, #tpu.memory_space<vmem>>, vector<8x128xf32>,
    %c0_8 = arith.constant 0 : index
    %c0_9 = arith.constant 0 : index
    %11 = vector.load %arg2[%c0_8, %c0_9] : memref<128x128xbf16, #tpu.memory_space<vmem>>, vector<128x128xbf16>
    %12 = arith.truncf %9 : vector<8x128xf32> to vector<8x128xbf16>
    %cst_10 = arith.constant dense<0.000000e+00> : vector<8x128xf32>
    %13 = tpu.matmul %12, %11, %cst_10 {dimension_numbers = #tpu.dot_dimension_numbers<[1], [0], [0], [1], [0, 0, 1, 1], [], []>} : vector<8x128xbf16>, vector<128x128xbf16>, vector<8x128xf32> -> vector<8x128xf32>
    %14 = vector.extract_strided_slice %0 {offsets = [1, 0], sizes = [1, 128], strides = [1, 1]} : vector<2x128xf32> to vector<1x128xf32>
    %15 = vector.broadcast %14 : vector<1x128xf32> to vector<8x128xf32>
    %16 = arith.addf %13, %15 : vector<8x128xf32>
    %c0_11 = arith.constant 0 : index
    %c0_12 = arith.constant 0 : index
    %17 = vector.load %arg5[%c0_11, %c0_12] : memref<8x128xf32, #tpu.memory_space<vmem>>, vector<8x128xf32>
    tpu.vector_store %arg5[%c0_11, %c0_12], %16 {strides = array<i32>} : memref<8x128xf32, #tpu.memory_space<vmem>>, vector<8x128xf32>,
    return
  }
}

</mosaic_0001>

<bundles_post_ra>
// kernel: _lambda_.5
= control target key start
LH: loop header
LB: loop body
LE: loop exit
PB: predicated region body
PF: predicated region fallthrough
CT: control target
= control target key end

     0   :  { %v377_v1 = vmov 0.0   ;;  %vm378_vm0 = vmmov 0   ;;  %s470_s0 = inlined_call_operand.vmem [shape: f32[8,128], index: 0, kind: input, shape index: {}]   ;;  %s471_s1 = inlined_call_operand.vmem [shape: bf16[128,128], index: 1, kind: input, shape index: {}]   ;;  %s472_s2 = inlined_call_operand.vmem [shape: bf16[128,128], index: 2, kind: input, shape index: {}]   ;;  %s473_s3 = inlined_call_operand.vmem [shape: f32[2,128], index: 3, kind: input, shape index: {}]   ;;  %s474_s4 = inlined_call_operand.hbm [shape: f32[8,128], index: 4, kind: output, shape index: {0}]   ;;  %s475_s5 = inlined_call_operand.vmem [shape: f32[8,128], index: 5, kind: output, shape index: {1}]  }
   0x1   :  { %v339_v0 = vld [vmem:[%s471_s1 + $0x38] sm:$0xff]   ;;  %296 = vmatprep.subr.bf16.mxu0 %v377_v1  ;;  %316 = vmatprep.subr.bf16.mxu1 %v377_v1  ;;  %v340_v2 = vld [vmem:[%s471_s1 + $0x30] sm:$0xff]   ;;  %v341_v3 = vld [vmem:[%s471_s1 + $0x28] sm:$0xff]  }
   0x2   :  { %297 = vmatpush3.bf16.msra.mxu0 %v339_v0  ;;  %312 = vmatprep.mubr.msk.bf16.mxu0 %vm378_vm0, %v377_v1  ;;  %v347_v4 = vld [vmem:[%s472_s2 + $0x38] sm:$0xff]   ;;  %v342_v5 = vld [vmem:[%s471_s1 + $0x20] sm:$0xff]   ;;  %v348_v6 = vld [vmem:[%s472_s2 + $0x30] sm:$0xff]  }
   0x3   :  { %298 = vmatprep.subr.bf16.mxu0 %v377_v1  ;;  %332 = vmatprep.mubr.msk.bf16.mxu1 %vm378_vm0, %v377_v1  ;;  %v343_v7 = vld [vmem:[%s471_s1 + $0x18] sm:$0xff]   ;;  %v349_v8 = vld [vmem:[%s472_s2 + $0x28] sm:$0xff]  }
   0x4   :  { %317 = vmatpush3.bf16.msra.mxu1 %v347_v4 }
   0x5   :  { %318 = vmatprep.subr.bf16.mxu1 %v377_v1 }
   0x6   :  { %299 = vmatpush3.bf16.msra.mxu0 %v340_v2 }
   0x7   :  { %300 = vmatprep.subr.bf16.mxu0 %v377_v1 }
   0x8   :  { %319 = vmatpush3.bf16.msra.mxu1 %v348_v6 }
   0x9   :  { %320 = vmatprep.subr.bf16.mxu1 %v377_v1 }
   0xa   :  { %301 = vmatpush3.bf16.msra.mxu0 %v341_v3 }
   0xb   :  { %302 = vmatprep.subr.bf16.mxu0 %v377_v1 }
   0xe   :  { %303 = vmatpush3.bf16.msra.mxu0 %v342_v5 }
   0xf   :  { %304 = vmatprep.subr.bf16.mxu0 %v377_v1 }
  0x10   :  { %11 = vsyncpa [#allocation3], 0  ;;  %v344_v9 = vld [vmem:[%s471_s1 + $0x10] sm:$0xff]   ;;  %321 = vmatpush3.bf16.msra.mxu1 %v349_v8  ;;  %v350_v10 = vld [vmem:[%s472_s2 + $0x20] sm:$0xff]   ;;  %v40_v19 = vlaneseq  ;;  %s379_s27 = smov [#allocation2]  }
  0x11   :  { %322 = vmatprep.subr.bf16.mxu1 %v377_v1  ;;  %v345_v11 = vld [vmem:[%s471_s1 + $0x8] sm:$0xff]   ;;  %v351_v12 = vld [vmem:[%s472_s2 + $0x18] sm:$0xff]   ;;  %v346_v13 = vld [vmem:[%s471_s1] sm:$0xff]  }
  0x12   :  { %305 = vmatpush3.bf16.msra.mxu0 %v343_v7  ;;  %v22_v14 = vld [vmem:[%s470_s0] sm:$0xff]  ;;  %v352_v15 = vld [vmem:[%s472_s2 + $0x10] sm:$0xff]   ;;  %v353_v17 = vld [vmem:[%s472_s2 + $0x8] sm:$0xff]   ;;  %v41_v20 = vshrl.u32 %v40_v19, 7 }
  0x13   :  { %306 = vmatprep.subr.bf16.mxu0 %v377_v1  ;;  %v39_v16 = vpack.c.bf16 %v22_v14, %v22_v14  ;;  %v354_v18 = vld [vmem:[%s472_s2] sm:$0xff]   ;;  %s250_s2 = sshll.u32 %s379_s27, 4  ;;  %s251_s2 = int_to_ptr.vmem [resolvable:$true] %s250_s2 }
  0x14   :  { %323 = vmatpush3.bf16.msra.mxu1 %v350_v10  ;;  %v42_v21 = vsub.s32 0, %v41_v20  ;;  %v21_v22 = vld [vmem:[%s473_s3] sm:$0x3]  ;;  %s355_s28 = scalar_lea.vmem %s251_s2, 128  ;;  %p360_p1 = scmp.lt.s32.totalorder %s251_s2, %s251_s2 }
  0x15   :  { %324 = vmatprep.subr.bf16.mxu1 %v377_v1  ;;  %p356_p0 = scmp.ne.s32.totalorder %s251_s2, %s355_s28  ;;  %p361_p2 = scmp.lt.s32.totalorder %s355_s28, %s355_s28 }
  0x16   :  { %307 = vmatpush3.bf16.msra.mxu0 %v344_v9  ;;  %v43_v23 = vrot.slane %v21_v22, %v42_v21 }
  0x17   :  { %308 = vmatprep.subr.bf16.mxu0 %v377_v1  ;;  %p362_p3 = por %p361_p2, %p360_p1 }
  0x18   :  { %325 = vmatpush3.bf16.msra.mxu1 %v351_v12 }
  0x19   :  { %326 = vmatprep.subr.bf16.mxu1 %v377_v1  ;;  %p363_p4 = pnand %p362_p3, %p356_p0 }
  0x1a   :  { %309 = vmatpush3.bf16.msra.mxu0 %v345_v11 }
  0x1b   :  { %310 = vmatprep.subr.bf16.mxu0 %v377_v1 }
  0x1c   :  { %327 = vmatpush3.bf16.msra.mxu1 %v352_v15 }
  0x1d   :  { %328 = vmatprep.subr.bf16.mxu1 %v377_v1 }
  0x1e   :  { %311 = vmatpush3.bf16.msra.mxu0 %v346_v13 }
  0x20   :  { %329 = vmatpush3.bf16.msra.mxu1 %v353_v17 }
  0x21   :  { %313 = vmatmul.mubr.bf16.vlgmr.msra.gmra.mxu0 %v39_v16  ;;  %330 = vmatprep.subr.bf16.mxu1 %v377_v1 }
  0x24   :  { %331 = vmatpush3.bf16.msra.mxu1 %v354_v18 }
  0xe1   :  { %v126_v24 = vpop.f32.mrf.mxu0 }
  0xe2   :  { %v127_v25 = vadd.f32 %v126_v24, %v43_v23 }
  0xe3   :  { %v314_v26 = vpop.f32.mrf.mxu0 }
  0xe4   :  { %v132_v27 = vmax.f32 %v127_v25, 0.0 }
  0xe5   :  { %v129_v28 = vpop.f32.mrf.mxu0 }
  0xe6   :  { %v150_v29 = vpack.c.bf16 %v132_v27, %v132_v27  ;;  %133 = vst [vmem:[#allocation2] sm:$0xff] %v132_v27 }
  0xe7   :  { %v315_v30 = vpop.f32.mrf.mxu0 }
  0xe8   :  { %333 = vmatmul.mubr.bf16.vlgmr.msra.gmra.mxu1 %v150_v29 }
  0xe9   :  { %366 = shalt.err (!%p363_p4)
}
  0xea   :  { %253 = dma.vmem_to_hbm [thread:$0]  %s251_s2, 128, %s474_s4, [#allocation3]   ;;  %v153_v31 = vsub.s32 1, %v41_v20 }
  0xec   :  { %v154_v32 = vrot.slane %v21_v22, %v153_v31 }
 0x1a8   :  { %v237_v33 = vpop.f32.mrf.mxu1 }
 0x1a9   :  { %v238_v34 = vadd.f32 %v237_v33, %v154_v32 }
 0x1aa   :  { %v334_v35 = vpop.f32.mrf.mxu1 }
 0x1ab   :  { %243 = vst [vmem:[%s475_s5] sm:$0xff] %v238_v34 }
 0x1ac   :  { %v240_v36 = vpop.f32.mrf.mxu1 }
 0x1ae   :  { %v335_v37 = vpop.f32.mrf.mxu1 }
 0x1af   :  { %375 = dma.done.wait [#allocation3], 128  }
 0x1b0   :  { %376 = vsyncadd [#allocation3], 4294967168 }
 0x1b1   :  { %261 = vsyncpa [#allocation3], 1 }

// kernel: _lambda_.4
= control target key start
LH: loop header
LB: loop body
LE: loop exit
PB: predicated region body
PF: predicated region fallthrough
CT: control target
= control target key end

     0   :  { %v1234_v0 = vmov 0.0   ;;  %vm38_vm0 = vcmask 1043456   ;;  %vm1235_vm1 = vmmov 0   ;;  %vm34_vm2 = vcmask 64512   ;;  %s1559_s1 = inlined_call_operand.vmem [shape: f32[8,128], index: 1, kind: input, shape index: {}]   ;;  %s1560_s0 = inlined_call_operand.vmem [shape: bf16[8,8], index: 0, kind: input, shape index: {}]   ;;  %s1561_s2 = inlined_call_operand.vmem [shape: bf16[128,384], index: 2, kind: input, shape index: {}]   ;;  %s1562_s6 = inlined_call_operand.vmem [shape: f32[8,128], index: 6, kind: input, shape index: {}]   ;;  %s1563_s7 = inlined_call_operand.vmem [shape: f32[8,8], index: 7, kind: input, shape index: {}]   ;;  %s1564_s3 = inlined_call_operand.vmem [shape: bf16[128,128], index: 3, kind: input, shape index: {}]   ;;  %s1565_s4 = inlined_call_operand.vmem [shape: bf16[128,128], index: 4, kind: input, shape index: {}]   ;;  %s1566_s5 = inlined_call_operand.vmem [shape: bf16[128,128], index: 5, kind: input, shape index: {}]   ;;  %s1567_s8 = inlined_call_operand.vmem [shape: f32[8,128], index: 8, kind: output, shape index: {}]  }
   0x1   :  { %1051 = vmatprep.subr.bf16.mxu1 %v1234_v0  ;;  %v1286_v1 = vld [vmem:[%s1559_s1] sm:$0xff]  ;;  %1053 = vmatprep.mubr.msk.bf16.mxu1 %vm1235_vm1, %v1234_v0  ;;  %v1172_v3 = vld [vmem:[%s1561_s2 + $0xac] ss:$12 sps:$4 sm:$0xff]   ;;  %v1173_v5 = vld [vmem:[%s1561_s2 + $0xb0] ss:$12 sps:$4 sm:$0xff]   ;;  %v1236_v29 = vmov 0   ;;  %v324_v35 = vlaneseq }
   0x2   :  { %v33_v2 = vpack.c.bf16 %v1286_v1, %v1286_v1  ;;  %1057 = vmatprep.subr.bf16.mxu0 %v1234_v0  ;;  %1073 = vmatprep.mubr.msk.bf16.mxu0 %vm1235_vm1, %v1234_v0  ;;  %v1301_v4 = vld [vmem:[%s1560_s0] sm:$0xf]  ;;  %v1170_v7 = vld [vmem:[%s1561_s2 + $0xa8] ss:$12 sps:$4 sm:$0xff]   ;;  %v1177_v9 = vld [vmem:[%s1561_s2 + $0x98] ss:$12 sps:$4 sm:$0xff]  }
   0x3   :  { %1058 = vmatpush3.bf16.msra.mxu0 %v1173_v5  ;;  %v1176_v8 = vld [vmem:[%s1561_s2 + $0x94] ss:$12 sps:$4 sm:$0xff]   ;;  %v1174_v10 = vld [vmem:[%s1561_s2 + $0x90] ss:$12 sps:$4 sm:$0xff]   ;;  %v1178_v13 = vld [vmem:[%s1561_s2 + $0x78] ss:$12 sps:$4 sm:$0xff]  }
   0x4   :  { %v40_v6 = vsel %vm38_vm0, %v33_v2, 0  ;;  %1059 = vmatprep.subr.bf16.mxu0 %v1234_v0  ;;  %v1181_v11 = vld [vmem:[%s1561_s2 + $0x80] ss:$12 sps:$4 sm:$0xff]   ;;  %v1180_v12 = vld [vmem:[%s1561_s2 + $0x7c] ss:$12 sps:$4 sm:$0xff]   ;;  %v1389_v36 = vshrl.u32 %v324_v35, 7 }
   0x5   :  { %1052 = vmatpush3.bf16.msra.mxu1 %v40_v6  ;;  %v1185_v14 = vld [vmem:[%s1561_s2 + $0x68] ss:$12 sps:$4 sm:$0xff]   ;;  %v1184_v15 = vld [vmem:[%s1561_s2 + $0x64] ss:$12 sps:$4 sm:$0xff]   ;;  %v1182_v16 = vld [vmem:[%s1561_s2 + $0x60] ss:$12 sps:$4 sm:$0xff]  }
   0x6   :  { %243 = vmatprep.subr.bf16.mxu1 %v1172_v3  ;;  %v1189_v17 = vld [vmem:[%s1561_s2 + $0x50] ss:$12 sps:$4 sm:$0xff]   ;;  %v1188_v18 = vld [vmem:[%s1561_s2 + $0x4c] ss:$12 sps:$4 sm:$0xff]   ;;  %v1186_v19 = vld [vmem:[%s1561_s2 + $0x48] ss:$12 sps:$4 sm:$0xff]  }
   0x7   :  { %1060 = vmatpush3.bf16.msra.mxu0 %v1177_v9  ;;  %v1193_v20 = vld [vmem:[%s1561_s2 + $0x38] ss:$12 sps:$4 sm:$0xff]   ;;  %v1192_v21 = vld [vmem:[%s1561_s2 + $0x34] ss:$12 sps:$4 sm:$0xff]   ;;  %v1190_v22 = vld [vmem:[%s1561_s2 + $0x30] ss:$12 sps:$4 sm:$0xff]  }
   0x8   :  { %1054 = vmatmul.mubr.msk.bf16.vlgmr.msra.gmra.mxu1 %vm34_vm2, %v1301_v4  ;;  %1061 = vmatprep.subr.bf16.mxu0 %v1234_v0  ;;  %v1197_v23 = vld [vmem:[%s1561_s2 + $0x20] ss:$12 sps:$4 sm:$0xff]   ;;  %v1196_v24 = vld [vmem:[%s1561_s2 + $0x1c] ss:$12 sps:$4 sm:$0xff]   ;;  %v1194_v25 = vld [vmem:[%s1561_s2 + $0x18] ss:$12 sps:$4 sm:$0xff]  }
   0x9   :  { %244 = vmatpush1.bf16.msra.mxu1 %v1170_v7  ;;  %v1200_v26 = vld [vmem:[%s1561_s2 + $0x4] ss:$12 sps:$4 sm:$0xff]   ;;  %v1198_v27 = vld [vmem:[%s1561_s2] ss:$12 sps:$4 sm:$0xff]   ;;  %v1201_v28 = vld [vmem:[%s1561_s2 + $0x8] ss:$12 sps:$4 sm:$0xff]   ;;  %275 = vmatprep.mubr.bf16.mxu1 %v1236_v29 }
   0xa   :  { %245 = vmatprep.subr.bf16.mxu1 %v1176_v8  ;;  %v336_v37 = vsub.s32 2, %v1389_v36  ;;  %v1395_v38 = vld [vmem:[%s1562_s6] sm:$0xff]  ;;  %v331_v39 = vsub.s32 1, %v1389_v36  ;;  %v326_v43 = vsub.s32 0, %v1389_v36 }
   0xb   :  { %1062 = vmatpush3.bf16.msra.mxu0 %v1181_v11  ;;  %v341_v59 = vld [vmem:[%s1563_s7] sm:$0xff] }
   0xc   :  { %1063 = vmatprep.subr.bf16.mxu0 %v1234_v0  ;;  %v337_v40 = vrot.slane %v1395_v38, %v336_v37  ;;  %v332_v41 = vrot.slane %v1395_v38, %v331_v39  ;;  %v327_v50 = vrot.slane %v1395_v38, %v326_v43 }
   0xd   :  { %246 = vmatpush1.bf16.msra.mxu1 %v1174_v10 }
   0xe   :  { %247 = vmatprep.subr.bf16.mxu1 %v1180_v12  ;;  %v1202_v12 = vld [vmem:[%s1564_s3 + $0x38] sm:$0xff]  }
   0xf   :  { %1064 = vmatpush3.bf16.msra.mxu0 %v1185_v14  ;;  %v1204_v14 = vld [vmem:[%s1564_s3 + $0x28] sm:$0xff]  }
  0x10   :  { %1065 = vmatprep.subr.bf16.mxu0 %v1234_v0 }
  0x11   :  { %248 = vmatpush1.bf16.msra.mxu1 %v1178_v13  ;;  %v1203_v13 = vld [vmem:[%s1564_s3 + $0x30] sm:$0xff]  }
  0x12   :  { %249 = vmatprep.subr.bf16.mxu1 %v1184_v15  ;;  %v1205_v15 = vld [vmem:[%s1564_s3 + $0x20] sm:$0xff]  }
  0x13   :  { %1066 = vmatpush3.bf16.msra.mxu0 %v1189_v17  ;;  %v1207_v17 = vld [vmem:[%s1564_s3 + $0x10] sm:$0xff]  }
  0x14   :  { %1067 = vmatprep.subr.bf16.mxu0 %v1234_v0 }
  0x15   :  { %250 = vmatpush1.bf16.msra.mxu1 %v1182_v16  ;;  %v1206_v16 = vld [vmem:[%s1564_s3 + $0x18] sm:$0xff]  }
  0x16   :  { %251 = vmatprep.subr.bf16.mxu1 %v1188_v18  ;;  %v1208_v18 = vld [vmem:[%s1564_s3 + $0x8] sm:$0xff]  }
  0x17   :  { %1068 = vmatpush3.bf16.msra.mxu0 %v1193_v20 }
  0x18   :  { %1069 = vmatprep.subr.bf16.mxu0 %v1234_v0 }
  0x19   :  { %252 = vmatpush1.bf16.msra.mxu1 %v1186_v19 }
  0x1a   :  { %253 = vmatprep.subr.bf16.mxu1 %v1192_v21 }
  0x1b   :  { %1070 = vmatpush3.bf16.msra.mxu0 %v1197_v23 }
  0x1c   :  { %1071 = vmatprep.subr.bf16.mxu0 %v1234_v0 }
  0x1d   :  { %254 = vmatpush1.bf16.msra.mxu1 %v1190_v22 }
  0x1e   :  { %255 = vmatprep.subr.bf16.mxu1 %v1196_v24 }
  0x1f   :  { %1072 = vmatpush3.bf16.msra.mxu0 %v1201_v28  ;;  %v1209_v28 = vld [vmem:[%s1564_s3] sm:$0xff]  }
  0x20   :  { %1083 = vmatprep.subr.bf16.mxu0 %v1234_v0 }
  0x21   :  { %256 = vmatpush1.bf16.msra.mxu1 %v1194_v25 }
  0x22   :  { %257 = vmatprep.subr.bf16.mxu1 %v1200_v26 }
  0x25   :  { %258 = vmatpush1.bf16.msra.mxu1 %v1198_v27 }
  0x26   :  { %1077 = vmatprep.subr.bf16.mxu1 %v1234_v0 }
  0xc8   :  { %v76_v30 = vpop.f32.mrf.mxu1 }
  0xc9   :  { %v114_v31 = vpack.c.bf16 %v76_v30, %v76_v30 }
  0xca   :  { %v1055_v32 = vpop.f32.mrf.mxu1 }
  0xcb   :  { %276 = vmatmul.mubr.bf16.vlgmr.msra.gmra.mxu1 %v114_v31  ;;  %1074 = vmatmul.mubr.bf16.vlgmr.msra.gmra.mxu0 %v114_v31 }
  0xcc   :  { %v79_v33 = vpop.f32.mrf.mxu1  ;;  %1079 = vmatprep.mubr.msk.bf16.mxu1 %vm1235_vm1, %v1234_v0  ;;  %1085 = vmatprep.mubr.msk.bf16.mxu0 %vm1235_vm1, %v1234_v0 }
  0xce   :  { %v1056_v34 = vpop.f32.mrf.mxu1 }
  0xcf   :  { %v506_v34 = vsub.s32 3, %v1389_v36 }
  0xd1   :  { %v507_v37 = vrot.slane %v1395_v38, %v506_v34 }
 0x18b   :  { %v277_v42 = vpop.f32.mrf.mxu1  ;;  %v318_v44 = vpop.f32.mrf.mxu0 }
 0x18c   :  { %v338_v45 = vadd.f32 %v337_v40, %v318_v44  ;;  %v328_v57 = vadd.f32 %v327_v50, %v277_v42  ;;  %v1458_v44 = vand.u32 127, %v324_v35 }
 0x18d   :  { %v279_v46 = vpop.f32.mrf.mxu1  ;;  %v1075_v47 = vpop.f32.mrf.mxu0 }
 0x18e   :  { %v395_v48 = vpack.c.bf16 %v338_v45, %v338_v45  ;;  %v333_v49 = vadd.f32 %v332_v41, %v279_v46  ;;  %v339_v58 = vpack.c.bf16 %v328_v57, %v328_v57  ;;  %vm598_vm3 = vcmp.lt.s32.totalorder %v1458_v44, 32 }
 0x18f   :  { %v281_v51 = vpop.f32.mrf.mxu1  ;;  %v321_v52 = vpop.f32.mrf.mxu0 }
 0x190   :  { %v400_v53 = vsel %vm38_vm0, %v395_v48, 0  ;;  %v340_v54 = vpack.c.bf16 %v333_v49, %v333_v49 }
 0x191   :  { %v282_v55 = vpop.f32.mrf.mxu1  ;;  %v1076_v56 = vpop.f32.mrf.mxu0  ;;  %1084 = vmatpush3.bf16.msra.mxu0 %v400_v53  ;;  %v615_v53 = vsub.s32 6, %v1389_v36 }
 0x192   :  { %1078 = vmatpush3.bf16.xpose.msra.mxu1 %v340_v54  ;;  %1095 = vmatprep.subr.bf16.mxu0 %v1234_v0  ;;  %v620_v54 = vsub.s32 7, %v1389_v36 }
 0x193   :  { %1089 = vmatprep.subr.bf16.mxu1 %v1234_v0  ;;  %v1466_v35 = vrot.slane %v1395_v38, %v615_v53 }
 0x194   :  { %v1469_v57 = vrot.slane %v1395_v38, %v620_v54 }
 0x199   :  { %1080 = vmatmul.mubr.bf16.vlgmr.msra.gmra.mxu1 %v339_v58 }
 0x19a   :  { %1091 = vmatprep.mubr.msk.bf16.mxu1 %vm1235_vm1, %v1234_v0 }
 0x259   :  { %v376_v60 = vpop.f32.mrf.mxu1 }
 0x25a   :  { %v377_v61 = vadd.f32 %v376_v60, %v341_v59 }
 0x25b   :  { %v1081_v62 = vpop.f32.mrf.mxu1 }
 0x25c   :  { %v382_v63 = vsel %vm34_vm2, %v377_v61, -inf }
 0x25d   :  { %383 = vmax.xlane.f32.xlu0 %v382_v63  ;;  %v379_v2 = vpop.f32.mrf.mxu1  ;;  %v1210_v63 = vld [vmem:[%s1565_s4 + $0x38] sm:$0xff]  }
 0x25e   :  { %v1211_v2 = vld [vmem:[%s1565_s4 + $0x30] sm:$0xff]  }
 0x25f   :  { %v1082_v3 = vpop.f32.mrf.mxu1 }
 0x260   :  { %v1213_v3 = vld [vmem:[%s1565_s4 + $0x20] sm:$0xff]  }
 0x2e6   :  { %v384_v5 = vpop.xlane.xlu0 %383 }
 0x2e7   :  { %v385_v6 = vsub.f32 %v377_v61, %v384_v5  ;;  %v1214_v5 = vld [vmem:[%s1565_s4 + $0x18] sm:$0xff]  }
 0x2e9   :  { %v386_v7 = vpack.c.bf16 %v385_v6, %v385_v6  ;;  %v1215_v6 = vld [vmem:[%s1565_s4 + $0x10] sm:$0xff]  }
 0x2eb   :  { %v388_v8 = vmul.bf16 1069105081, %v386_v7  ;;  %v1216_v7 = vld [vmem:[%s1565_s4 + $0x8] sm:$0xff]  }
 0x2ed   :  { %1226 = vpow.bf16 %v388_v8  ;;  %v1217_v8 = vld [vmem:[%s1565_s4] sm:$0xff]  }
 0x2fb   :  { %v1227_v9 = vpop.eup %1226 }
 0x2fc   :  { %1086 = vmatmul.mubr.msk.bf16.vlgmr.msra.gmra.mxu0 %vm34_vm2, %v1227_v9  ;;  %v390_v10 = vunpack.c.l.bf16 %v1227_v9  ;;  %v1218_v9 = vld [vmem:[%s1566_s5 + $0x38] sm:$0xff]  }
 0x2fd   :  { %1111 = vmatprep.mubr.msk.bf16.mxu0 %vm1235_vm1, %v1234_v0  ;;  %1096 = vmatpush3.bf16.msra.mxu0 %v1202_v12  ;;  %v1221_v12 = vld [vmem:[%s1566_s5 + $0x20] sm:$0xff]  }
 0x2fe   :  { %v391_v11 = vsel %vm34_vm2, %v390_v10, 0.0  ;;  %1097 = vmatprep.subr.bf16.mxu0 %v1234_v0  ;;  %v1219_v10 = vld [vmem:[%s1566_s5 + $0x30] sm:$0xff]  }
 0x2ff   :  { %392 = vadd.xlane.f32.xlu0 %v391_v11  ;;  %v1220_v11 = vld [vmem:[%s1566_s5 + $0x28] sm:$0xff]  }
 0x301   :  { %1098 = vmatpush3.bf16.msra.mxu0 %v1203_v13  ;;  %v1222_v13 = vld [vmem:[%s1566_s5 + $0x18] sm:$0xff]  }
 0x302   :  { %1099 = vmatprep.subr.bf16.mxu0 %v1234_v0 }
 0x305   :  { %1100 = vmatpush3.bf16.msra.mxu0 %v1204_v14  ;;  %v1223_v14 = vld [vmem:[%s1566_s5 + $0x10] sm:$0xff]  }
 0x306   :  { %1101 = vmatprep.subr.bf16.mxu0 %v1234_v0 }
 0x309   :  { %1102 = vmatpush3.bf16.msra.mxu0 %v1205_v15 }
 0x30a   :  { %1103 = vmatprep.subr.bf16.mxu0 %v1234_v0 }
 0x30d   :  { %1104 = vmatpush3.bf16.msra.mxu0 %v1206_v16 }
 0x30e   :  { %1105 = vmatprep.subr.bf16.mxu0 %v1234_v0 }
 0x311   :  { %1106 = vmatpush3.bf16.msra.mxu0 %v1207_v17 }
 0x312   :  { %1107 = vmatprep.subr.bf16.mxu0 %v1234_v0 }
 0x315   :  { %1108 = vmatpush3.bf16.msra.mxu0 %v1208_v18 }
 0x316   :  { %1109 = vmatprep.subr.bf16.mxu0 %v1234_v0 }
 0x319   :  { %1110 = vmatpush3.bf16.msra.mxu0 %v1209_v28 }
 0x31a   :  { %1141 = vmatprep.subr.bf16.mxu0 %v1234_v0 }
 0x388   :  { %v393_v19 = vpop.xlane.xlu0 %392 }
 0x389   :  { %1228 = vrcp.f32 %v393_v19 }
 0x396   :  { %v1229_v20 = vpop.eup %1228 }
 0x3bc   :  { %v436_v21 = vpop.f32.mrf.mxu0 }
 0x3bd   :  { %v442_v22 = vmul.f32 %v1229_v20, %v436_v21  ;;  %v1224_v20 = vld [vmem:[%s1566_s5 + $0x8] sm:$0xff]   ;;  %v1225_v21 = vld [vmem:[%s1566_s5] sm:$0xff]  }
 0x3be   :  { %v1087_v23 = vpop.f32.mrf.mxu0 }
 0x3bf   :  { %v459_v24 = vpack.c.bf16 %v442_v22, %v442_v22  ;;  %v687_v22 = vsub.s32 4, %v1389_v36 }
 0x3c0   :  { %v439_v25 = vpop.f32.mrf.mxu0 }
 0x3c1   :  { %v461_v26 = vsel %vm38_vm0, %v459_v24, 0  ;;  %v688_v23 = vrot.slane %v1395_v38, %v687_v22 }
 0x3c2   :  { %v1088_v27 = vpop.f32.mrf.mxu0  ;;  %1090 = vmatpush3.bf16.msra.mxu1 %v461_v26 }
 0x3c3   :  { %1115 = vmatprep.subr.bf16.mxu1 %v1234_v0 }
 0x3c5   :  { %1092 = vmatmul.mubr.msk.bf16.vlgmr.msra.gmra.mxu1 %vm34_vm2, %v1301_v4 }
 0x3c6   :  { %1117 = vmatprep.mubr.msk.bf16.mxu1 %vm1235_vm1, %v1234_v0 }
 0x485   :  { %v497_v29 = vpop.f32.mrf.mxu1 }
 0x486   :  { %v503_v30 = vpack.c.bf16 %v497_v29, %v497_v29 }
 0x487   :  { %v1093_v31 = vpop.f32.mrf.mxu1 }
 0x488   :  { %1112 = vmatmul.mubr.bf16.vlgmr.msra.gmra.mxu0 %v503_v30 }
 0x489   :  { %v500_v32 = vpop.f32.mrf.mxu1  ;;  %1157 = vmatprep.mubr.msk.bf16.mxu0 %vm1235_vm1, %v1234_v0  ;;  %1142 = vmatpush3.bf16.msra.mxu0 %v1218_v9 }
 0x48a   :  { %1143 = vmatprep.subr.bf16.mxu0 %v1234_v0 }
 0x48b   :  { %v1094_v33 = vpop.f32.mrf.mxu1 }
 0x48d   :  { %1144 = vmatpush3.bf16.msra.mxu0 %v1219_v10 }
 0x48e   :  { %1145 = vmatprep.subr.bf16.mxu0 %v1234_v0 }
 0x491   :  { %1146 = vmatpush3.bf16.msra.mxu0 %v1220_v11 }
 0x492   :  { %1147 = vmatprep.subr.bf16.mxu0 %v1234_v0 }
 0x495   :  { %1148 = vmatpush3.bf16.msra.mxu0 %v1221_v12 }
 0x496   :  { %1149 = vmatprep.subr.bf16.mxu0 %v1234_v0 }
 0x499   :  { %1150 = vmatpush3.bf16.msra.mxu0 %v1222_v13 }
 0x49a   :  { %1151 = vmatprep.subr.bf16.mxu0 %v1234_v0 }
 0x49d   :  { %1152 = vmatpush3.bf16.msra.mxu0 %v1223_v14 }
 0x49e   :  { %1153 = vmatprep.subr.bf16.mxu0 %v1234_v0 }
 0x4a1   :  { %1154 = vmatpush3.bf16.msra.mxu0 %v1224_v20 }
 0x4a2   :  { %1155 = vmatprep.subr.bf16.mxu0 %v1234_v0 }
 0x4a5   :  { %1156 = vmatpush3.bf16.msra.mxu0 %v1225_v21 }
 0x548   :  { %v590_v39 = vpop.f32.mrf.mxu0 }
 0x549   :  { %v591_v40 = vadd.f32 %v590_v39, %v507_v37  ;;  %v886_v39 = vsub.s32 5, %v1389_v36 }
 0x54a   :  { %v1113_v41 = vpop.f32.mrf.mxu0 }
 0x54b   :  { %599 = vadd.xlane.f32.xlu1 %v591_v40 }
 0x54c   :  { %v593_v42 = vpop.f32.mrf.mxu0 }
 0x54e   :  { %v1114_v43 = vpop.f32.mrf.mxu0 }
 0x5d4   :  { %v600_v45 = vpop.xlane.xlu1 %599 }
 0x5d5   :  { %v601_v46 = vmul.f32 0.03125, %v600_v45 }
 0x5d7   :  { %v602_v47 = vsub.f32 %v591_v40, %v601_v46  ;;  %v887_v40 = vrot.slane %v1395_v38, %v886_v39 }
 0x5d9   :  { %v605_v48 = vsel %vm598_vm3, %v602_v47, 0.0 }
 0x5da   :  { %v606_v49 = vmul.f32 %v605_v48, %v605_v48 }
 0x5dc   :  { %607 = vadd.xlane.f32.xlu1 %v606_v49 }
 0x665   :  { %v608_v50 = vpop.xlane.xlu1 %607 }
 0x666   :  { %v609_v51 = vmul.f32 0.03125, %v608_v50 }
 0x668   :  { %v610_v52 = vadd.f32 1e-05, %v609_v51 }
 0x66a   :  { %1230 = vrsqrt.f32 %v610_v52 }
 0x677   :  { %v1231_v55 = vpop.eup %1230 }
 0x678   :  { %v612_v56 = vmul.f32 %v1231_v55, %v605_v48 }
 0x67a   :  { %v617_v58 = vmul.f32 %v1466_v35, %v612_v56 }
 0x67c   :  { %v622_v59 = vadd.f32 %v1469_v57, %v617_v58 }
 0x67e   :  { %v623_v60 = vadd.f32 %v622_v59, %v1286_v1  ;;  %v1212_v1 = vld [vmem:[%s1565_s4 + $0x28] sm:$0xff]  }
 0x680   :  { %v640_v61 = vpack.c.bf16 %v623_v60, %v623_v60 }
 0x682   :  { %v642_v62 = vsel %vm38_vm0, %v640_v61, 0 }
 0x683   :  { %1116 = vmatpush3.bf16.msra.mxu1 %v642_v62 }
 0x684   :  { %1121 = vmatprep.subr.bf16.mxu1 %v1234_v0 }
 0x686   :  { %1118 = vmatmul.mubr.msk.bf16.vlgmr.msra.gmra.mxu1 %vm34_vm2, %v1301_v4 }
 0x687   :  { %1122 = vmatpush3.bf16.msra.mxu1 %v1210_v63  ;;  %1137 = vmatprep.mubr.msk.bf16.mxu1 %vm1235_vm1, %v1234_v0 }
 0x688   :  { %1123 = vmatprep.subr.bf16.mxu1 %v1234_v0 }
 0x68b   :  { %1124 = vmatpush3.bf16.msra.mxu1 %v1211_v2 }
 0x68c   :  { %1125 = vmatprep.subr.bf16.mxu1 %v1234_v0 }
 0x68f   :  { %1126 = vmatpush3.bf16.msra.mxu1 %v1212_v1 }
 0x690   :  { %1127 = vmatprep.subr.bf16.mxu1 %v1234_v0 }
 0x693   :  { %1128 = vmatpush3.bf16.msra.mxu1 %v1213_v3 }
 0x694   :  { %1129 = vmatprep.subr.bf16.mxu1 %v1234_v0 }
 0x697   :  { %1130 = vmatpush3.bf16.msra.mxu1 %v1214_v5 }
 0x698   :  { %1131 = vmatprep.subr.bf16.mxu1 %v1234_v0 }
 0x69b   :  { %1132 = vmatpush3.bf16.msra.mxu1 %v1215_v6 }
 0x69c   :  { %1133 = vmatprep.subr.bf16.mxu1 %v1234_v0 }
 0x69f   :  { %1134 = vmatpush3.bf16.msra.mxu1 %v1216_v7 }
 0x6a0   :  { %1135 = vmatprep.subr.bf16.mxu1 %v1234_v0 }
 0x6a3   :  { %1136 = vmatpush3.bf16.msra.mxu1 %v1217_v8 }
 0x6a4   :  { %1161 = vmatprep.subr.bf16.mxu1 %v1234_v0 }
 0x746   :  { %v678_v15 = vpop.f32.mrf.mxu1 }
 0x747   :  { %v684_v16 = vpack.c.bf16 %v678_v15, %v678_v15 }
 0x748   :  { %v1119_v17 = vpop.f32.mrf.mxu1 }
 0x749   :  { %1138 = vmatmul.mubr.bf16.vlgmr.msra.gmra.mxu1 %v684_v16 }
 0x74a   :  { %v681_v18 = vpop.f32.mrf.mxu1  ;;  %1163 = vmatprep.mubr.msk.bf16.mxu1 %vm1235_vm1, %v1234_v0 }
 0x74c   :  { %v1120_v19 = vpop.f32.mrf.mxu1 }
 0x809   :  { %v771_v24 = vpop.f32.mrf.mxu1 }
 0x80a   :  { %v772_v25 = vadd.f32 %v771_v24, %v688_v23 }
 0x80b   :  { %v1139_v26 = vpop.f32.mrf.mxu1 }
 0x80c   :  { %v777_v27 = vmax.f32 %v772_v25, 0.0 }
 0x80d   :  { %v774_v28 = vpop.f32.mrf.mxu1 }
 0x80e   :  { %v794_v29 = vpack.c.bf16 %v777_v27, %v777_v27 }
 0x80f   :  { %v1140_v30 = vpop.f32.mrf.mxu1 }
 0x810   :  { %1158 = vmatmul.mubr.bf16.vlgmr.msra.gmra.mxu0 %v794_v29 }
 0x8d0   :  { %v877_v31 = vpop.f32.mrf.mxu0 }
 0x8d1   :  { %v883_v32 = vpack.c.bf16 %v877_v31, %v877_v31 }
 0x8d2   :  { %v1159_v0 = vpop.f32.mrf.mxu0 }
 0x8d3   :  { %v889_v33 = vsel %vm38_vm0, %v883_v32, 0 }
 0x8d4   :  { %v880_v34 = vpop.f32.mrf.mxu0  ;;  %1162 = vmatpush3.bf16.msra.mxu1 %v889_v33 }
 0x8d6   :  { %v1160_v37 = vpop.f32.mrf.mxu0 }
 0x8d7   :  { %1164 = vmatmul.mubr.msk.bf16.vlgmr.msra.gmra.mxu1 %vm34_vm2, %v1301_v4 }
 0x997   :  { %v925_v41 = vpop.f32.mrf.mxu1 }
 0x998   :  { %v926_v42 = vadd.f32 %v925_v41, %v887_v40 }
 0x999   :  { %v1165_v43 = vpop.f32.mrf.mxu1 }
 0x99a   :  { %931 = vadd.xlane.f32.xlu0 %v926_v42 }
 0x99b   :  { %v928_v45 = vpop.f32.mrf.mxu1 }
 0x99d   :  { %v1166_v46 = vpop.f32.mrf.mxu1 }
 0xa23   :  { %v932_v47 = vpop.xlane.xlu0 %931 }
 0xa24   :  { %v933_v48 = vmul.f32 0.03125, %v932_v47 }
 0xa26   :  { %v934_v49 = vsub.f32 %v926_v42, %v933_v48 }
 0xa28   :  { %v935_v50 = vsel %vm598_vm3, %v934_v49, 0.0 }
 0xa29   :  { %v936_v51 = vmul.f32 %v935_v50, %v935_v50 }
 0xa2b   :  { %937 = vadd.xlane.f32.xlu1 %v936_v51 }
 0xab4   :  { %v938_v52 = vpop.xlane.xlu1 %937 }
 0xab5   :  { %v939_v4 = vmul.f32 0.03125, %v938_v52 }
 0xab7   :  { %v940_v53 = vadd.f32 1e-05, %v939_v4 }
 0xab9   :  { %1232 = vrsqrt.f32 %v940_v53 }
 0xac6   :  { %v1233_v36 = vpop.eup %1232 }
 0xac7   :  { %v942_v38 = vmul.f32 %v1233_v36, %v935_v50 }
 0xac9   :  { %v943_v54 = vmul.f32 %v942_v38, %v1466_v35 }
 0xacb   :  { %v944_v55 = vadd.f32 %v943_v54, %v1469_v57 }
 0xacd   :  { %945 = vst [vmem:[%s1567_s8] sm:$0xff] %v944_v55 }

// kernel: _lambda_.3
= control target key start
LH: loop header
LB: loop body
LE: loop exit
PB: predicated region body
PF: predicated region fallthrough
CT: control target
= control target key end

     0   :  { %v1238_v0 = vmov 0.0   ;;  %vm37_vm0 = vcmask 1043456   ;;  %vm1239_vm1 = vmmov 0   ;;  %vm33_vm2 = vcmask 64512   ;;  %s1564_s1 = inlined_call_operand.vmem [shape: f32[8,128], index: 1, kind: input, shape index: {}]   ;;  %s1565_s0 = inlined_call_operand.vmem [shape: bf16[8,8], index: 0, kind: input, shape index: {}]   ;;  %s1566_s2 = inlined_call_operand.vmem [shape: bf16[128,384], index: 2, kind: input, shape index: {}]   ;;  %s1567_s6 = inlined_call_operand.vmem [shape: f32[8,128], index: 6, kind: input, shape index: {}]   ;;  %s1568_s3 = inlined_call_operand.vmem [shape: bf16[128,128], index: 3, kind: input, shape index: {}]   ;;  %s1569_s8 = inlined_call_operand.vmem [shape: f32[8,8], index: 8, kind: output, shape index: {1}]   ;;  %s1570_s4 = inlined_call_operand.vmem [shape: bf16[128,128], index: 4, kind: input, shape index: {}]   ;;  %s1571_s5 = inlined_call_operand.vmem [shape: bf16[128,128], index: 5, kind: input, shape index: {}]   ;;  %s1572_s7 = inlined_call_operand.vmem [shape: f32[8,128], index: 7, kind: output, shape index: {0}]  }
   0x1   :  { %1055 = vmatprep.subr.bf16.mxu1 %v1238_v0  ;;  %v1290_v1 = vld [vmem:[%s1564_s1] sm:$0xff]  ;;  %1057 = vmatprep.mubr.msk.bf16.mxu1 %vm1239_vm1, %v1238_v0  ;;  %v1176_v3 = vld [vmem:[%s1566_s2 + $0xac] ss:$12 sps:$4 sm:$0xff]   ;;  %v1177_v5 = vld [vmem:[%s1566_s2 + $0xb0] ss:$12 sps:$4 sm:$0xff]   ;;  %v1240_v29 = vmov 0   ;;  %v323_v35 = vlaneseq }
   0x2   :  { %v32_v2 = vpack.c.bf16 %v1290_v1, %v1290_v1  ;;  %1061 = vmatprep.subr.bf16.mxu0 %v1238_v0  ;;  %1077 = vmatprep.mubr.msk.bf16.mxu0 %vm1239_vm1, %v1238_v0  ;;  %v1305_v4 = vld [vmem:[%s1565_s0] sm:$0xf]  ;;  %v1174_v7 = vld [vmem:[%s1566_s2 + $0xa8] ss:$12 sps:$4 sm:$0xff]   ;;  %v1181_v9 = vld [vmem:[%s1566_s2 + $0x98] ss:$12 sps:$4 sm:$0xff]  }
   0x3   :  { %1062 = vmatpush3.bf16.msra.mxu0 %v1177_v5  ;;  %v1180_v8 = vld [vmem:[%s1566_s2 + $0x94] ss:$12 sps:$4 sm:$0xff]   ;;  %v1178_v10 = vld [vmem:[%s1566_s2 + $0x90] ss:$12 sps:$4 sm:$0xff]   ;;  %v1182_v13 = vld [vmem:[%s1566_s2 + $0x78] ss:$12 sps:$4 sm:$0xff]  }
   0x4   :  { %v39_v6 = vsel %vm37_vm0, %v32_v2, 0  ;;  %1063 = vmatprep.subr.bf16.mxu0 %v1238_v0  ;;  %v1185_v11 = vld [vmem:[%s1566_s2 + $0x80] ss:$12 sps:$4 sm:$0xff]   ;;  %v1184_v12 = vld [vmem:[%s1566_s2 + $0x7c] ss:$12 sps:$4 sm:$0xff]   ;;  %v1393_v36 = vshrl.u32 %v323_v35, 7 }
   0x5   :  { %1056 = vmatpush3.bf16.msra.mxu1 %v39_v6  ;;  %v1189_v14 = vld [vmem:[%s1566_s2 + $0x68] ss:$12 sps:$4 sm:$0xff]   ;;  %v1188_v15 = vld [vmem:[%s1566_s2 + $0x64] ss:$12 sps:$4 sm:$0xff]   ;;  %v1186_v16 = vld [vmem:[%s1566_s2 + $0x60] ss:$12 sps:$4 sm:$0xff]  }
   0x6   :  { %242 = vmatprep.subr.bf16.mxu1 %v1176_v3  ;;  %v1193_v17 = vld [vmem:[%s1566_s2 + $0x50] ss:$12 sps:$4 sm:$0xff]   ;;  %v1192_v18 = vld [vmem:[%s1566_s2 + $0x4c] ss:$12 sps:$4 sm:$0xff]   ;;  %v1190_v19 = vld [vmem:[%s1566_s2 + $0x48] ss:$12 sps:$4 sm:$0xff]  }
   0x7   :  { %1064 = vmatpush3.bf16.msra.mxu0 %v1181_v9  ;;  %v1197_v20 = vld [vmem:[%s1566_s2 + $0x38] ss:$12 sps:$4 sm:$0xff]   ;;  %v1196_v21 = vld [vmem:[%s1566_s2 + $0x34] ss:$12 sps:$4 sm:$0xff]   ;;  %v1194_v22 = vld [vmem:[%s1566_s2 + $0x30] ss:$12 sps:$4 sm:$0xff]  }
   0x8   :  { %1058 = vmatmul.mubr.msk.bf16.vlgmr.msra.gmra.mxu1 %vm33_vm2, %v1305_v4  ;;  %1065 = vmatprep.subr.bf16.mxu0 %v1238_v0  ;;  %v1201_v23 = vld [vmem:[%s1566_s2 + $0x20] ss:$12 sps:$4 sm:$0xff]   ;;  %v1200_v24 = vld [vmem:[%s1566_s2 + $0x1c] ss:$12 sps:$4 sm:$0xff]   ;;  %v1198_v25 = vld [vmem:[%s1566_s2 + $0x18] ss:$12 sps:$4 sm:$0xff]  }
   0x9   :  { %243 = vmatpush1.bf16.msra.mxu1 %v1174_v7  ;;  %v1204_v26 = vld [vmem:[%s1566_s2 + $0x4] ss:$12 sps:$4 sm:$0xff]   ;;  %v1202_v27 = vld [vmem:[%s1566_s2] ss:$12 sps:$4 sm:$0xff]   ;;  %v1205_v28 = vld [vmem:[%s1566_s2 + $0x8] ss:$12 sps:$4 sm:$0xff]   ;;  %274 = vmatprep.mubr.bf16.mxu1 %v1240_v29 }
   0xa   :  { %244 = vmatprep.subr.bf16.mxu1 %v1180_v8  ;;  %v335_v37 = vsub.s32 2, %v1393_v36  ;;  %v1399_v38 = vld [vmem:[%s1567_s6] sm:$0xff]  ;;  %v330_v39 = vsub.s32 1, %v1393_v36  ;;  %v325_v43 = vsub.s32 0, %v1393_v36 }
   0xb   :  { %1066 = vmatpush3.bf16.msra.mxu0 %v1185_v11  ;;  %v1207_v11 = vld [vmem:[%s1568_s3 + $0x30] sm:$0xff]  }
   0xc   :  { %1067 = vmatprep.subr.bf16.mxu0 %v1238_v0  ;;  %v336_v40 = vrot.slane %v1399_v38, %v335_v37  ;;  %v331_v41 = vrot.slane %v1399_v38, %v330_v39  ;;  %v326_v50 = vrot.slane %v1399_v38, %v325_v43  ;;  %v1463_v43 = vand.u32 127, %v323_v35 }
   0xd   :  { %245 = vmatpush1.bf16.msra.mxu1 %v1178_v10  ;;  %v1206_v10 = vld [vmem:[%s1568_s3 + $0x38] sm:$0xff]  }
   0xe   :  { %246 = vmatprep.subr.bf16.mxu1 %v1184_v12  ;;  %v1208_v12 = vld [vmem:[%s1568_s3 + $0x28] sm:$0xff]   ;;  %vm598_vm3 = vcmp.lt.s32.totalorder %v1463_v43, 32 }
   0xf   :  { %1068 = vmatpush3.bf16.msra.mxu0 %v1189_v14  ;;  %v1210_v14 = vld [vmem:[%s1568_s3 + $0x18] sm:$0xff]  }
  0x10   :  { %1069 = vmatprep.subr.bf16.mxu0 %v1238_v0 }
  0x11   :  { %247 = vmatpush1.bf16.msra.mxu1 %v1182_v13  ;;  %v1209_v13 = vld [vmem:[%s1568_s3 + $0x20] sm:$0xff]  }
  0x12   :  { %248 = vmatprep.subr.bf16.mxu1 %v1188_v15  ;;  %v1211_v15 = vld [vmem:[%s1568_s3 + $0x10] sm:$0xff]  }
  0x13   :  { %1070 = vmatpush3.bf16.msra.mxu0 %v1193_v17 }
  0x14   :  { %1071 = vmatprep.subr.bf16.mxu0 %v1238_v0 }
  0x15   :  { %249 = vmatpush1.bf16.msra.mxu1 %v1186_v16  ;;  %v1212_v16 = vld [vmem:[%s1568_s3 + $0x8] sm:$0xff]  }
  0x16   :  { %250 = vmatprep.subr.bf16.mxu1 %v1192_v18 }
  0x17   :  { %1072 = vmatpush3.bf16.msra.mxu0 %v1197_v20 }
  0x18   :  { %1073 = vmatprep.subr.bf16.mxu0 %v1238_v0 }
  0x19   :  { %251 = vmatpush1.bf16.msra.mxu1 %v1190_v19 }
  0x1a   :  { %252 = vmatprep.subr.bf16.mxu1 %v1196_v21 }
  0x1b   :  { %1074 = vmatpush3.bf16.msra.mxu0 %v1201_v23 }
  0x1c   :  { %1075 = vmatprep.subr.bf16.mxu0 %v1238_v0 }
  0x1d   :  { %253 = vmatpush1.bf16.msra.mxu1 %v1194_v22 }
  0x1e   :  { %254 = vmatprep.subr.bf16.mxu1 %v1200_v24 }
  0x1f   :  { %1076 = vmatpush3.bf16.msra.mxu0 %v1205_v28 }
  0x20   :  { %1087 = vmatprep.subr.bf16.mxu0 %v1238_v0 }
  0x21   :  { %255 = vmatpush1.bf16.msra.mxu1 %v1198_v25 }
  0x22   :  { %256 = vmatprep.subr.bf16.mxu1 %v1204_v26 }
  0x25   :  { %257 = vmatpush1.bf16.msra.mxu1 %v1202_v27  ;;  %v1213_v27 = vld [vmem:[%s1568_s3] sm:$0xff]  }
  0x26   :  { %1081 = vmatprep.subr.bf16.mxu1 %v1238_v0 }
  0xc8   :  { %v75_v30 = vpop.f32.mrf.mxu1 }
  0xc9   :  { %v113_v31 = vpack.c.bf16 %v75_v30, %v75_v30 }
  0xca   :  { %v1059_v32 = vpop.f32.mrf.mxu1 }
  0xcb   :  { %275 = vmatmul.mubr.bf16.vlgmr.msra.gmra.mxu1 %v113_v31  ;;  %1078 = vmatmul.mubr.bf16.vlgmr.msra.gmra.mxu0 %v113_v31 }
  0xcc   :  { %v78_v33 = vpop.f32.mrf.mxu1  ;;  %1083 = vmatprep.mubr.msk.bf16.mxu1 %vm1239_vm1, %v1238_v0  ;;  %1089 = vmatprep.mubr.msk.bf16.mxu0 %vm1239_vm1, %v1238_v0 }
  0xcd   :  { %v506_v33 = vsub.s32 3, %v1393_v36 }
  0xce   :  { %v1060_v34 = vpop.f32.mrf.mxu1 }
  0xcf   :  { %v507_v34 = vrot.slane %v1399_v38, %v506_v33 }
 0x18b   :  { %v276_v42 = vpop.f32.mrf.mxu1  ;;  %v317_v44 = vpop.f32.mrf.mxu0 }
 0x18c   :  { %v337_v45 = vadd.f32 %v336_v40, %v317_v44  ;;  %v327_v57 = vadd.f32 %v326_v50, %v276_v42 }
 0x18d   :  { %v278_v46 = vpop.f32.mrf.mxu1  ;;  %v1079_v47 = vpop.f32.mrf.mxu0 }
 0x18e   :  { %v393_v48 = vpack.c.bf16 %v337_v45, %v337_v45  ;;  %v332_v49 = vadd.f32 %v331_v41, %v278_v46  ;;  %v338_v58 = vpack.c.bf16 %v327_v57, %v327_v57 }
 0x18f   :  { %v280_v51 = vpop.f32.mrf.mxu1  ;;  %v320_v52 = vpop.f32.mrf.mxu0 }
 0x190   :  { %v398_v53 = vsel %vm37_vm0, %v393_v48, 0  ;;  %v339_v54 = vpack.c.bf16 %v332_v49, %v332_v49  ;;  %v615_v52 = vsub.s32 6, %v1393_v36 }
 0x191   :  { %v281_v55 = vpop.f32.mrf.mxu1  ;;  %v1080_v56 = vpop.f32.mrf.mxu0  ;;  %1088 = vmatpush3.bf16.msra.mxu0 %v398_v53  ;;  %v620_v53 = vsub.s32 7, %v1393_v36 }
 0x192   :  { %1082 = vmatpush3.bf16.xpose.msra.mxu1 %v339_v54  ;;  %1099 = vmatprep.subr.bf16.mxu0 %v1238_v0  ;;  %v1471_v35 = vrot.slane %v1399_v38, %v615_v52 }
 0x193   :  { %1093 = vmatprep.subr.bf16.mxu1 %v1238_v0  ;;  %v1474_v56 = vrot.slane %v1399_v38, %v620_v53 }
 0x199   :  { %1084 = vmatmul.mubr.bf16.vlgmr.msra.gmra.mxu1 %v338_v58 }
 0x19a   :  { %1095 = vmatprep.mubr.msk.bf16.mxu1 %vm1239_vm1, %v1238_v0 }
 0x259   :  { %v374_v59 = vpop.f32.mrf.mxu1 }
 0x25a   :  { %v380_v60 = vsel %vm33_vm2, %v374_v59, -inf }
 0x25b   :  { %381 = vmax.xlane.f32.xlu0 %v380_v60  ;;  %v1085_v61 = vpop.f32.mrf.mxu1 }
 0x25d   :  { %v377_v62 = vpop.f32.mrf.mxu1 }
 0x25e   :  { %v1214_v62 = vld [vmem:[%s1570_s4 + $0x38] sm:$0xff]  }
 0x25f   :  { %v1086_v63 = vpop.f32.mrf.mxu1 }
 0x260   :  { %v1215_v63 = vld [vmem:[%s1570_s4 + $0x30] sm:$0xff]  }
 0x2e4   :  { %v382_v2 = vpop.xlane.xlu0 %381 }
 0x2e5   :  { %v383_v3 = vsub.f32 %v374_v59, %v382_v2  ;;  %v1217_v2 = vld [vmem:[%s1570_s4 + $0x20] sm:$0xff]  }
 0x2e7   :  { %v384_v5 = vpack.c.bf16 %v383_v3, %v383_v3  ;;  %v1218_v3 = vld [vmem:[%s1570_s4 + $0x18] sm:$0xff]  }
 0x2e9   :  { %v386_v6 = vmul.bf16 1069105081, %v384_v5  ;;  %v1219_v5 = vld [vmem:[%s1570_s4 + $0x10] sm:$0xff]  }
 0x2eb   :  { %1230 = vpow.bf16 %v386_v6  ;;  %v1220_v6 = vld [vmem:[%s1570_s4 + $0x8] sm:$0xff]  }
 0x2f9   :  { %v1231_v7 = vpop.eup %1230 }
 0x2fa   :  { %1090 = vmatmul.mubr.msk.bf16.vlgmr.msra.gmra.mxu0 %vm33_vm2, %v1231_v7  ;;  %v388_v8 = vunpack.c.l.bf16 %v1231_v7  ;;  %v1221_v7 = vld [vmem:[%s1570_s4] sm:$0xff]  }
 0x2fb   :  { %1115 = vmatprep.mubr.msk.bf16.mxu0 %vm1239_vm1, %v1238_v0  ;;  %1100 = vmatpush3.bf16.msra.mxu0 %v1206_v10  ;;  %v1224_v10 = vld [vmem:[%s1571_s5 + $0x28] sm:$0xff]  }
 0x2fc   :  { %v389_v9 = vsel %vm33_vm2, %v388_v8, 0.0  ;;  %1101 = vmatprep.subr.bf16.mxu0 %v1238_v0 }
 0x2fd   :  { %390 = vadd.xlane.f32.xlu0 %v389_v9  ;;  %v1223_v9 = vld [vmem:[%s1571_s5 + $0x30] sm:$0xff]  }
 0x2ff   :  { %1102 = vmatpush3.bf16.msra.mxu0 %v1207_v11  ;;  %v1225_v11 = vld [vmem:[%s1571_s5 + $0x20] sm:$0xff]  }
 0x300   :  { %1103 = vmatprep.subr.bf16.mxu0 %v1238_v0 }
 0x303   :  { %1104 = vmatpush3.bf16.msra.mxu0 %v1208_v12  ;;  %v1226_v12 = vld [vmem:[%s1571_s5 + $0x18] sm:$0xff]  }
 0x304   :  { %1105 = vmatprep.subr.bf16.mxu0 %v1238_v0 }
 0x307   :  { %1106 = vmatpush3.bf16.msra.mxu0 %v1209_v13  ;;  %v1227_v13 = vld [vmem:[%s1571_s5 + $0x10] sm:$0xff]  }
 0x308   :  { %1107 = vmatprep.subr.bf16.mxu0 %v1238_v0 }
 0x30b   :  { %1108 = vmatpush3.bf16.msra.mxu0 %v1210_v14 }
 0x30c   :  { %1109 = vmatprep.subr.bf16.mxu0 %v1238_v0 }
 0x30f   :  { %1110 = vmatpush3.bf16.msra.mxu0 %v1211_v15 }
 0x310   :  { %1111 = vmatprep.subr.bf16.mxu0 %v1238_v0 }
 0x313   :  { %1112 = vmatpush3.bf16.msra.mxu0 %v1212_v16 }
 0x314   :  { %1113 = vmatprep.subr.bf16.mxu0 %v1238_v0 }
 0x317   :  { %1114 = vmatpush3.bf16.msra.mxu0 %v1213_v27 }
 0x318   :  { %1145 = vmatprep.subr.bf16.mxu0 %v1238_v0 }
 0x386   :  { %v391_v17 = vpop.xlane.xlu0 %390 }
 0x387   :  { %1232 = vrcp.f32 %v391_v17 }
 0x394   :  { %v1233_v18 = vpop.eup %1232 }
 0x395   :  { %v441_v19 = vmul.f32 %v1233_v18, %v388_v8  ;;  %v1222_v8 = vld [vmem:[%s1571_s5 + $0x38] sm:$0xff]  }
 0x397   :  { %442 = vst.msk [vmem:[%s1569_s8] sm:$0xff] %vm33_vm2, %v441_v19  ;;  %v1228_v19 = vld [vmem:[%s1571_s5 + $0x8] sm:$0xff]  }
 0x3ba   :  { %v434_v20 = vpop.f32.mrf.mxu0 }
 0x3bb   :  { %v440_v21 = vmul.f32 %v1233_v18, %v434_v20  ;;  %v1229_v20 = vld [vmem:[%s1571_s5] sm:$0xff]  }
 0x3bc   :  { %v1091_v22 = vpop.f32.mrf.mxu0 }
 0x3bd   :  { %v459_v23 = vpack.c.bf16 %v440_v21, %v440_v21  ;;  %v687_v21 = vsub.s32 4, %v1393_v36 }
 0x3be   :  { %v437_v24 = vpop.f32.mrf.mxu0 }
 0x3bf   :  { %v461_v25 = vsel %vm37_vm0, %v459_v23, 0  ;;  %v688_v22 = vrot.slane %v1399_v38, %v687_v21 }
 0x3c0   :  { %v1092_v26 = vpop.f32.mrf.mxu0  ;;  %1094 = vmatpush3.bf16.msra.mxu1 %v461_v25 }
 0x3c1   :  { %1119 = vmatprep.subr.bf16.mxu1 %v1238_v0 }
 0x3c3   :  { %1096 = vmatmul.mubr.msk.bf16.vlgmr.msra.gmra.mxu1 %vm33_vm2, %v1305_v4 }
 0x3c4   :  { %1121 = vmatprep.mubr.msk.bf16.mxu1 %vm1239_vm1, %v1238_v0 }
 0x483   :  { %v497_v28 = vpop.f32.mrf.mxu1 }
 0x484   :  { %v503_v29 = vpack.c.bf16 %v497_v28, %v497_v28 }
 0x485   :  { %v1097_v30 = vpop.f32.mrf.mxu1 }
 0x486   :  { %1116 = vmatmul.mubr.bf16.vlgmr.msra.gmra.mxu0 %v503_v29 }
 0x487   :  { %v500_v31 = vpop.f32.mrf.mxu1  ;;  %1161 = vmatprep.mubr.msk.bf16.mxu0 %vm1239_vm1, %v1238_v0  ;;  %1146 = vmatpush3.bf16.msra.mxu0 %v1222_v8 }
 0x488   :  { %1147 = vmatprep.subr.bf16.mxu0 %v1238_v0 }
 0x489   :  { %v1098_v32 = vpop.f32.mrf.mxu1 }
 0x48b   :  { %1148 = vmatpush3.bf16.msra.mxu0 %v1223_v9 }
 0x48c   :  { %1149 = vmatprep.subr.bf16.mxu0 %v1238_v0 }
 0x48f   :  { %1150 = vmatpush3.bf16.msra.mxu0 %v1224_v10 }
 0x490   :  { %1151 = vmatprep.subr.bf16.mxu0 %v1238_v0 }
 0x493   :  { %1152 = vmatpush3.bf16.msra.mxu0 %v1225_v11 }
 0x494   :  { %1153 = vmatprep.subr.bf16.mxu0 %v1238_v0 }
 0x497   :  { %1154 = vmatpush3.bf16.msra.mxu0 %v1226_v12 }
 0x498   :  { %1155 = vmatprep.subr.bf16.mxu0 %v1238_v0 }
 0x49b   :  { %1156 = vmatpush3.bf16.msra.mxu0 %v1227_v13 }
 0x49c   :  { %1157 = vmatprep.subr.bf16.mxu0 %v1238_v0 }
 0x49f   :  { %1158 = vmatpush3.bf16.msra.mxu0 %v1228_v19 }
 0x4a0   :  { %1159 = vmatprep.subr.bf16.mxu0 %v1238_v0 }
 0x4a3   :  { %1160 = vmatpush3.bf16.msra.mxu0 %v1229_v20 }
 0x546   :  { %v590_v37 = vpop.f32.mrf.mxu0 }
 0x547   :  { %v591_v39 = vadd.f32 %v590_v37, %v507_v34  ;;  %v886_v37 = vsub.s32 5, %v1393_v36 }
 0x548   :  { %v1117_v40 = vpop.f32.mrf.mxu0 }
 0x549   :  { %599 = vadd.xlane.f32.xlu1 %v591_v39 }
 0x54a   :  { %v593_v41 = vpop.f32.mrf.mxu0 }
 0x54c   :  { %v1118_v42 = vpop.f32.mrf.mxu0 }
 0x5d2   :  { %v600_v44 = vpop.xlane.xlu1 %599 }
 0x5d3   :  { %v601_v45 = vmul.f32 0.03125, %v600_v44 }
 0x5d5   :  { %v602_v46 = vsub.f32 %v591_v39, %v601_v45  ;;  %v887_v39 = vrot.slane %v1399_v38, %v886_v37 }
 0x5d7   :  { %v605_v47 = vsel %vm598_vm3, %v602_v46, 0.0 }
 0x5d8   :  { %v606_v48 = vmul.f32 %v605_v47, %v605_v47 }
 0x5da   :  { %607 = vadd.xlane.f32.xlu1 %v606_v48 }
 0x663   :  { %v608_v49 = vpop.xlane.xlu1 %607 }
 0x664   :  { %v609_v50 = vmul.f32 0.03125, %v608_v49 }
 0x666   :  { %v610_v51 = vadd.f32 1e-05, %v609_v50 }
 0x668   :  { %1234 = vrsqrt.f32 %v610_v51 }
 0x675   :  { %v1235_v54 = vpop.eup %1234 }
 0x676   :  { %v612_v55 = vmul.f32 %v1235_v54, %v605_v47 }
 0x678   :  { %v617_v57 = vmul.f32 %v1471_v35, %v612_v55 }
 0x67a   :  { %v622_v58 = vadd.f32 %v1474_v56, %v617_v57 }
 0x67c   :  { %v623_v59 = vadd.f32 %v622_v58, %v1290_v1  ;;  %v1216_v1 = vld [vmem:[%s1570_s4 + $0x28] sm:$0xff]  }
 0x67e   :  { %v640_v60 = vpack.c.bf16 %v623_v59, %v623_v59 }
 0x680   :  { %v642_v61 = vsel %vm37_vm0, %v640_v60, 0 }
 0x681   :  { %1120 = vmatpush3.bf16.msra.mxu1 %v642_v61 }
 0x682   :  { %1125 = vmatprep.subr.bf16.mxu1 %v1238_v0 }
 0x684   :  { %1122 = vmatmul.mubr.msk.bf16.vlgmr.msra.gmra.mxu1 %vm33_vm2, %v1305_v4 }
 0x685   :  { %1126 = vmatpush3.bf16.msra.mxu1 %v1214_v62  ;;  %1141 = vmatprep.mubr.msk.bf16.mxu1 %vm1239_vm1, %v1238_v0 }
 0x686   :  { %1127 = vmatprep.subr.bf16.mxu1 %v1238_v0 }
 0x689   :  { %1128 = vmatpush3.bf16.msra.mxu1 %v1215_v63 }
 0x68a   :  { %1129 = vmatprep.subr.bf16.mxu1 %v1238_v0 }
 0x68d   :  { %1130 = vmatpush3.bf16.msra.mxu1 %v1216_v1 }
 0x68e   :  { %1131 = vmatprep.subr.bf16.mxu1 %v1238_v0 }
 0x691   :  { %1132 = vmatpush3.bf16.msra.mxu1 %v1217_v2 }
 0x692   :  { %1133 = vmatprep.subr.bf16.mxu1 %v1238_v0 }
 0x695   :  { %1134 = vmatpush3.bf16.msra.mxu1 %v1218_v3 }
 0x696   :  { %1135 = vmatprep.subr.bf16.mxu1 %v1238_v0 }
 0x699   :  { %1136 = vmatpush3.bf16.msra.mxu1 %v1219_v5 }
 0x69a   :  { %1137 = vmatprep.subr.bf16.mxu1 %v1238_v0 }
 0x69d   :  { %1138 = vmatpush3.bf16.msra.mxu1 %v1220_v6 }
 0x69e   :  { %1139 = vmatprep.subr.bf16.mxu1 %v1238_v0 }
 0x6a1   :  { %1140 = vmatpush3.bf16.msra.mxu1 %v1221_v7 }
 0x6a2   :  { %1165 = vmatprep.subr.bf16.mxu1 %v1238_v0 }
 0x744   :  { %v678_v14 = vpop.f32.mrf.mxu1 }
 0x745   :  { %v684_v15 = vpack.c.bf16 %v678_v14, %v678_v14 }
 0x746   :  { %v1123_v16 = vpop.f32.mrf.mxu1 }
 0x747   :  { %1142 = vmatmul.mubr.bf16.vlgmr.msra.gmra.mxu1 %v684_v15 }
 0x748   :  { %v681_v17 = vpop.f32.mrf.mxu1  ;;  %1167 = vmatprep.mubr.msk.bf16.mxu1 %vm1239_vm1, %v1238_v0 }
 0x74a   :  { %v1124_v18 = vpop.f32.mrf.mxu1 }
 0x807   :  { %v771_v23 = vpop.f32.mrf.mxu1 }
 0x808   :  { %v772_v24 = vadd.f32 %v771_v23, %v688_v22 }
 0x809   :  { %v1143_v25 = vpop.f32.mrf.mxu1 }
 0x80a   :  { %v777_v26 = vmax.f32 %v772_v24, 0.0 }
 0x80b   :  { %v774_v27 = vpop.f32.mrf.mxu1 }
 0x80c   :  { %v794_v28 = vpack.c.bf16 %v777_v26, %v777_v26 }
 0x80d   :  { %v1144_v29 = vpop.f32.mrf.mxu1 }
 0x80e   :  { %1162 = vmatmul.mubr.bf16.vlgmr.msra.gmra.mxu0 %v794_v28 }
 0x8ce   :  { %v877_v30 = vpop.f32.mrf.mxu0 }
 0x8cf   :  { %v883_v31 = vpack.c.bf16 %v877_v30, %v877_v30 }
 0x8d0   :  { %v1163_v0 = vpop.f32.mrf.mxu0 }
 0x8d1   :  { %v889_v32 = vsel %vm37_vm0, %v883_v31, 0 }
 0x8d2   :  { %v880_v33 = vpop.f32.mrf.mxu0  ;;  %1166 = vmatpush3.bf16.msra.mxu1 %v889_v32 }
 0x8d4   :  { %v1164_v34 = vpop.f32.mrf.mxu0 }
 0x8d5   :  { %1168 = vmatmul.mubr.msk.bf16.vlgmr.msra.gmra.mxu1 %vm33_vm2, %v1305_v4 }
 0x995   :  { %v925_v40 = vpop.f32.mrf.mxu1 }
 0x996   :  { %v926_v41 = vadd.f32 %v925_v40, %v887_v39 }
 0x997   :  { %v1169_v42 = vpop.f32.mrf.mxu1 }
 0x998   :  { %931 = vadd.xlane.f32.xlu0 %v926_v41 }
 0x999   :  { %v928_v44 = vpop.f32.mrf.mxu1 }
 0x99b   :  { %v1170_v45 = vpop.f32.mrf.mxu1 }
 0xa21   :  { %v932_v46 = vpop.xlane.xlu0 %931 }
 0xa22   :  { %v933_v47 = vmul.f32 0.03125, %v932_v46 }
 0xa24   :  { %v934_v48 = vsub.f32 %v926_v41, %v933_v47 }
 0xa26   :  { %v935_v49 = vsel %vm598_vm3, %v934_v48, 0.0 }
 0xa27   :  { %v936_v50 = vmul.f32 %v935_v49, %v935_v49 }
 0xa29   :  { %937 = vadd.xlane.f32.xlu1 %v936_v50 }
 0xab2   :  { %v938_v51 = vpop.xlane.xlu1 %937 }
 0xab3   :  { %v939_v4 = vmul.f32 0.03125, %v938_v51 }
 0xab5   :  { %v940_v52 = vadd.f32 1e-05, %v939_v4 }
 0xab7   :  { %1236 = vrsqrt.f32 %v940_v52 }
 0xac4   :  { %v1237_v36 = vpop.eup %1236 }
 0xac5   :  { %v942_v38 = vmul.f32 %v1237_v36, %v935_v49 }
 0xac7   :  { %v943_v53 = vmul.f32 %v942_v38, %v1471_v35 }
 0xac9   :  { %v944_v54 = vadd.f32 %v943_v53, %v1474_v56 }
 0xacb   :  { %945 = vst [vmem:[%s1572_s7] sm:$0xff] %v944_v54 }

</bundles_post_ra>
